<compile_context>
chip_gen: v5e
topology: v5e:2x2
jax: 0.10.0
libtpu: 0.0.40
codegen_flags: <defaults>
</compile_context>

<pallas_src>
import functools

import jax
import jax.numpy as jnp
from jax.experimental import pallas as pl
from jax.experimental.pallas import tpu as pltpu

LANE = 128
NEG_INF = jnp.float32(-1e30)


def _round_up(n, m):
    return ((n + m - 1) // m) * m


def mlp_softmax_kernel(x_ref, w1_ref, b1_ref, w2_ref, b2_ref, w3_ref, b3_ref,
                       o_ref):
    # x / weights are bf16 (lane-dense, zero-padded); accumulate in f32 on MXU.
    x = x_ref[...]                                               # (TB, Pin) bf16

    h1 = jnp.dot(x, w1_ref[...], preferred_element_type=jnp.float32)
    h1 = jnp.maximum(h1 + b1_ref[...], 0.0)                      # f32 (TB, P1)

    h2 = jnp.dot(h1.astype(jnp.bfloat16), w2_ref[...],
                 preferred_element_type=jnp.float32)
    h2 = jnp.maximum(h2 + b2_ref[...], 0.0)                      # f32 (TB, P2)

    logits = jnp.dot(h2.astype(jnp.bfloat16), w3_ref[...],
                     preferred_element_type=jnp.float32)
    # b3 was padded with -1e30 in the unused output lanes, so the padded
    # logits vanish under exp() with no explicit in-kernel mask.
    logits = logits + b3_ref[...]                                # f32 (TB, Pout)

    # Numerically-stable softmax over the last dim; exact normalization so
    # rows sum to 1 within f32 precision.
    m = jnp.max(logits, axis=-1, keepdims=True)
    e = jnp.exp(logits - m)                                      # padded lanes -> 0
    denom = jnp.sum(e, axis=-1, keepdims=True)
    o_ref[...] = (e / denom).astype(o_ref.dtype)


def pad_params(params):
    """One-time (init-time) padding/casting of the parameters.

    Keeps the per-call wrapper to a single x pad; returns lane-dense bf16
    weights, f32 biases, and the logical dims.
    """
    w1, b1, w2, b2, w3, b3 = params
    n_in, n_hi1 = w1.shape
    n_hi2 = w2.shape[1]
    n_out = w3.shape[1]
    p_in, p_h1, p_h2, p_out = (_round_up(d, LANE)
                               for d in (n_in, n_hi1, n_hi2, n_out))

    w1p = jnp.zeros((p_in, p_h1), jnp.bfloat16).at[:n_in, :n_hi1].set(
        w1.astype(jnp.bfloat16))
    b1p = jnp.zeros((1, p_h1), jnp.float32).at[:, :n_hi1].set(b1)
    w2p = jnp.zeros((p_h1, p_h2), jnp.bfloat16).at[:n_hi1, :n_hi2].set(
        w2.astype(jnp.bfloat16))
    b2p = jnp.zeros((1, p_h2), jnp.float32).at[:, :n_hi2].set(b2)
    w3p = jnp.zeros((p_h2, p_out), jnp.bfloat16).at[:n_hi2, :n_out].set(
        w3.astype(jnp.bfloat16))
    # Padded output lanes get -1e30 so they drop out of the softmax for free.
    b3p = jnp.full((1, p_out), NEG_INF, jnp.float32).at[:, :n_out].set(b3)

    dims = (n_in, n_hi1, n_hi2, n_out)
    return (w1p, b1p, w2p, b2p, w3p, b3p), dims


def net_forward(x, padded_params, dims, *, tile_b=256):
    w1p, b1p, w2p, b2p, w3p, b3p = padded_params
    n_in, n_hi1, n_hi2, n_out = dims
    p_in = w1p.shape[0]
    p_out = w3p.shape[1]
    B = x.shape[0]

    # Batch tiling: single grid step whenever the sublane-padded batch fits in
    # one tile (removes per-step pipeline overhead); otherwise 256-row tiles.
    b_pad8 = _round_up(B, 8)
    if b_pad8 <= tile_b:
        tile_b = b_pad8
    b_pad = _round_up(b_pad8, tile_b)
    grid = (b_pad // tile_b,)

    # Only x is padded per call (params were padded once at init time).
    xp = jnp.zeros((b_pad, p_in), jnp.bfloat16).at[:B, :n_in].set(
        x.astype(jnp.bfloat16))

    def resident(shape):
        # Same block every grid step -> stays VMEM-resident (no re-DMA).
        return pl.BlockSpec(shape, lambda i: (0, 0))

    # Cost estimate with the real (unpadded) work.
    flops = 2 * B * (n_in * n_hi1 + n_hi1 * n_hi2 + n_hi2 * n_out)
    bytes_accessed = (B * n_in * 4
                      + (n_in * n_hi1 + n_hi1 * n_hi2 + n_hi2 * n_out) * 2
                      + (n_hi1 + n_hi2 + n_out) * 4
                      + B * n_out * 4)

    out_padded = pl.pallas_call(
        mlp_softmax_kernel,
        out_shape=jax.ShapeDtypeStruct((b_pad, p_out), jnp.float32),
        grid_spec=pl.GridSpec(
            grid=grid,
            in_specs=[
                pl.BlockSpec((tile_b, p_in), lambda i: (i, 0)),   # x tile
                resident(w1p.shape), resident(b1p.shape),         # layer 1
                resident(w2p.shape), resident(b2p.shape),         # layer 2
                resident(w3p.shape), resident(b3p.shape),         # layer 3
            ],
            out_specs=pl.BlockSpec((tile_b, p_out), lambda i: (i, 0)),
        ),
        compiler_params=pltpu.CompilerParams(
            dimension_semantics=(
                ("arbitrary",) if grid == (1,) else ("parallel",))),
        cost_estimate=pl.CostEstimate(
            flops=flops,
            transcendentals=B * n_out,
            bytes_accessed=bytes_accessed),
    )(xp, w1p, b1p, w2p, b2p, w3p, b3p)

    return out_padded[:B, :n_out]


def reference_forward(x, params):
    w1, b1, w2, b2, w3, b3 = params
    h1 = jnp.maximum(x @ w1 + b1, 0.0)
    h2 = jnp.maximum(h1 @ w2 + b2, 0.0)
    return jax.nn.softmax(h2 @ w3 + b3, axis=-1)


def init_linear(key, n_in, n_out):
    # PyTorch-style init: U(-1/sqrt(fan_in), 1/sqrt(fan_in)).
    kw, kb = jax.random.split(key)
    bound = 1.0 / jnp.sqrt(jnp.float32(n_in))
    # stored as (in, out) = transpose of torch's (out, in) layout
    w = jax.random.uniform(kw, (n_in, n_out), jnp.float32, -bound, bound)
    b = jax.random.uniform(kb, (1, n_out), jnp.float32, -bound, bound)
    return w, b


if __name__ == "__main__":
    # Shapes consistent with the script: 200 two-gaussian 2-D points,
    # Net(n_in=2, n_hi1=32, n_hi2=32, n_out=2).
    n_in, n_hi1, n_hi2, n_out = 2, 32, 32, 2

    key = jax.random.PRNGKey(0)
    k0, k1, kl1, kl2, kl3 = jax.random.split(key, 5)

    x0 = jax.random.normal(k0, (100, n_in), jnp.float32) + 1.0
    x1 = jax.random.normal(k1, (100, n_in), jnp.float32) - 1.0
    x = jnp.concatenate([x0, x1], axis=0)                        # (200, 2)

    w1, b1 = init_linear(kl1, n_in, n_hi1)
    w2, b2 = init_linear(kl2, n_hi1, n_hi2)
    w3, b3 = init_linear(kl3, n_hi2, n_out)
    params = (w1, b1, w2, b2, w3, b3)

    # Pad / cast parameters once (hot path only pads x).
    padded_params, dims = pad_params(params)
    forward = jax.jit(functools.partial(net_forward, dims=dims))

    out = forward(x, padded_params)
    out = jax.block_until_ready(out)

    # sanity: shape, softmax rows sum to 1, matches f32 reference (bf16 matmuls)
    assert out.shape == (x.shape[0], n_out)
    assert jnp.allclose(jnp.sum(out, axis=-1), 1.0, atol=1e-3)
    ref = reference_forward(x, params)
    assert jnp.allclose(out, ref, atol=5e-2)

    print("KERNEL_OK")
</pallas_src>

<mosaic_0001>
module attributes {stable_mosaic.version = 11 : i64} {
  func.func @mlp_softmax_kernel(%arg0: i32, %arg1: memref<200x128xbf16, #tpu.memory_space<vmem>>, %arg2: memref<128x128xbf16, #tpu.memory_space<vmem>>, %arg3: memref<1x128xf32, #tpu.memory_space<vmem>>, %arg4: memref<128x128xbf16, #tpu.memory_space<vmem>>, %arg5: memref<1x128xf32, #tpu.memory_space<vmem>>, %arg6: memref<128x128xbf16, #tpu.memory_space<vmem>>, %arg7: memref<1x128xf32, #tpu.memory_space<vmem>>, %arg8: memref<200x128xf32, #tpu.memory_space<vmem>>) attributes {dimension_semantics = [#tpu.dimension_semantics<arbitrary>], iteration_bounds = array<i64: 1>, scalar_prefetch = 0 : i64, scratch_operands = 0 : i64, tpu.core_type = #tpu.core_type<tc>, window_params = [{transform_indices = @transform_0, window_bounds = array<i64: 200, 128>}, {pipeline_mode = #tpu.pipeline_mode<synchronous>, transform_indices = @transform_1, window_bounds = array<i64: 128, 128>}, {pipeline_mode = #tpu.pipeline_mode<synchronous>, transform_indices = @transform_2, window_bounds = array<i64: 1, 128>}, {pipeline_mode = #tpu.pipeline_mode<synchronous>, transform_indices = @transform_3, window_bounds = array<i64: 128, 128>}, {pipeline_mode = #tpu.pipeline_mode<synchronous>, transform_indices = @transform_4, window_bounds = array<i64: 1, 128>}, {pipeline_mode = #tpu.pipeline_mode<synchronous>, transform_indices = @transform_5, window_bounds = array<i64: 128, 128>}, {pipeline_mode = #tpu.pipeline_mode<synchronous>, transform_indices = @transform_6, window_bounds = array<i64: 1, 128>}, {transform_indices = @transform_7, window_bounds = array<i64: 200, 128>}]} {
    %c0 = arith.constant 0 : index
    %c0_0 = arith.constant 0 : index
    %0 = vector.load %arg1[%c0, %c0_0] : memref<200x128xbf16, #tpu.memory_space<vmem>>, vector<200x128xbf16>
    %c0_1 = arith.constant 0 : index
    %c0_2 = arith.constant 0 : index
    %1 = vector.load %arg2[%c0_1, %c0_2] : memref<128x128xbf16, #tpu.memory_space<vmem>>, vector<128x128xbf16>
    %cst = arith.constant dense<0.000000e+00> : vector<200x128xf32>
    %2 = tpu.matmul %0, %1, %cst {dimension_numbers = #tpu.dot_dimension_numbers<[1], [0], [0], [1], [0, 0, 1, 1], [], []>} : vector<200x128xbf16>, vector<128x128xbf16>, vector<200x128xf32> -> vector<200x128xf32>
    %c0_3 = arith.constant 0 : index
    %c0_4 = arith.constant 0 : index
    %3 = vector.load %arg3[%c0_3, %c0_4] : memref<1x128xf32, #tpu.memory_space<vmem>>, vector<1x128xf32>
    %4 = vector.broadcast %3 : vector<1x128xf32> to vector<200x128xf32>
    %5 = arith.addf %2, %4 : vector<200x128xf32>
    %cst_5 = arith.constant 0.000000e+00 : f32
    %6 = vector.broadcast %cst_5 : f32 to vector<200x128xf32>
    %7 = arith.maximumf %5, %6 : vector<200x128xf32>
    %8 = arith.truncf %7 : vector<200x128xf32> to vector<200x128xbf16>
    %c0_6 = arith.constant 0 : index
    %c0_7 = arith.constant 0 : index
    %9 = vector.load %arg4[%c0_6, %c0_7] : memref<128x128xbf16, #tpu.memory_space<vmem>>, vector<128x128xbf16>
    %cst_8 = arith.constant dense<0.000000e+00> : vector<200x128xf32>
    %10 = tpu.matmul %8, %9, %cst_8 {dimension_numbers = #tpu.dot_dimension_numbers<[1], [0], [0], [1], [0, 0, 1, 1], [], []>} : vector<200x128xbf16>, vector<128x128xbf16>, vector<200x128xf32> -> vector<200x128xf32>
    %c0_9 = arith.constant 0 : index
    %c0_10 = arith.constant 0 : index
    %11 = vector.load %arg5[%c0_9, %c0_10] : memref<1x128xf32, #tpu.memory_space<vmem>>, vector<1x128xf32>
    %12 = vector.broadcast %11 : vector<1x128xf32> to vector<200x128xf32>
    %13 = arith.addf %10, %12 : vector<200x128xf32>
    %cst_11 = arith.constant 0.000000e+00 : f32
    %14 = vector.broadcast %cst_11 : f32 to vector<200x128xf32>
    %15 = arith.maximumf %13, %14 : vector<200x128xf32>
    %16 = arith.truncf %15 : vector<200x128xf32> to vector<200x128xbf16>
    %c0_12 = arith.constant 0 : index
    %c0_13 = arith.constant 0 : index
    %17 = vector.load %arg6[%c0_12, %c0_13] : memref<128x128xbf16, #tpu.memory_space<vmem>>, vector<128x128xbf16>
    %cst_14 = arith.constant dense<0.000000e+00> : vector<200x128xf32>
    %18 = tpu.matmul %16, %17, %cst_14 {dimension_numbers = #tpu.dot_dimension_numbers<[1], [0], [0], [1], [0, 0, 1, 1], [], []>} : vector<200x128xbf16>, vector<128x128xbf16>, vector<200x128xf32> -> vector<200x128xf32>
    %c0_15 = arith.constant 0 : index
    %c0_16 = arith.constant 0 : index
    %19 = vector.load %arg7[%c0_15, %c0_16] : memref<1x128xf32, #tpu.memory_space<vmem>>, vector<1x128xf32>
    %20 = vector.broadcast %19 : vector<1x128xf32> to vector<200x128xf32>
    %21 = arith.addf %18, %20 : vector<200x128xf32>
    %cst_17 = arith.constant dense<0xFF800000> : vector<200xf32>
    %22 = vector.multi_reduction <maximumf>, %21, %cst_17 [1] : vector<200x128xf32> to vector<200xf32>
    %23 = vector.shape_cast %22 : vector<200xf32> to vector<200x1xf32>
    %24 = vector.broadcast %23 : vector<200x1xf32> to vector<200x128xf32>
    %25 = arith.subf %21, %24 : vector<200x128xf32>
    %26 = math.exp %25 : vector<200x128xf32>
    %cst_18 = arith.constant dense<0.000000e+00> : vector<200xf32>
    %27 = vector.multi_reduction <add>, %26, %cst_18 [1] : vector<200x128xf32> to vector<200xf32>
    %28 = vector.shape_cast %27 : vector<200xf32> to vector<200x1xf32>
    %29 = vector.broadcast %28 : vector<200x1xf32> to vector<200x128xf32>
    %30 = arith.divf %26, %29 : vector<200x128xf32>
    %c0_19 = arith.constant 0 : index
    %c0_20 = arith.constant 0 : index
    %31 = vector.load %arg8[%c0_19, %c0_20] : memref<200x128xf32, #tpu.memory_space<vmem>>, vector<200x128xf32>
    tpu.vector_store %arg8[%c0_19, %c0_20], %30 {strides = array<i32>} : memref<200x128xf32, #tpu.memory_space<vmem>>, vector<200x128xf32>,
    return
  }
  func.func @transform_0(%arg0: i32) -> (i32, i32) {
    %c0_i32 = arith.constant 0 : i32
    %c0_i32_0 = arith.constant 0 : i32
    return %arg0, %c0_i32 : i32, i32
  }
  func.func @transform_1(%arg0: i32) -> (i32, i32) {
    %c0_i32 = arith.constant 0 : i32
    %c0_i32_0 = arith.constant 0 : i32
    %c0_i32_1 = arith.constant 0 : i32
    return %c0_i32, %c0_i32_0 : i32, i32
  }
  func.func @transform_2(%arg0: i32) -> (i32, i32) {
    %c0_i32 = arith.constant 0 : i32
    %c0_i32_0 = arith.constant 0 : i32
    %c0_i32_1 = arith.constant 0 : i32
    return %c0_i32, %c0_i32_0 : i32, i32
  }
  func.func @transform_3(%arg0: i32) -> (i32, i32) {
    %c0_i32 = arith.constant 0 : i32
    %c0_i32_0 = arith.constant 0 : i32
    %c0_i32_1 = arith.constant 0 : i32
    return %c0_i32, %c0_i32_0 : i32, i32
  }
  func.func @transform_4(%arg0: i32) -> (i32, i32) {
    %c0_i32 = arith.constant 0 : i32
    %c0_i32_0 = arith.constant 0 : i32
    %c0_i32_1 = arith.constant 0 : i32
    return %c0_i32, %c0_i32_0 : i32, i32
  }
  func.func @transform_5(%arg0: i32) -> (i32, i32) {
    %c0_i32 = arith.constant 0 : i32
    %c0_i32_0 = arith.constant 0 : i32
    %c0_i32_1 = arith.constant 0 : i32
    return %c0_i32, %c0_i32_0 : i32, i32
  }
  func.func @transform_6(%arg0: i32) -> (i32, i32) {
    %c0_i32 = arith.constant 0 : i32
    %c0_i32_0 = arith.constant 0 : i32
    %c0_i32_1 = arith.constant 0 : i32
    return %c0_i32, %c0_i32_0 : i32, i32
  }
  func.func @transform_7(%arg0: i32) -> (i32, i32) {
    %c0_i32 = arith.constant 0 : i32
    %c0_i32_0 = arith.constant 0 : i32
    return %arg0, %c0_i32 : i32, i32
  }
}

</mosaic_0001>

<bundles_post_ra>
// kernel: net_forward.1
= control target key start
LH: loop header
LB: loop body
LE: loop exit
PB: predicated region body
PF: predicated region fallthrough
CT: control target
= control target key end

     0   :  { %s2058_s1 = inlined_call_operand.vmem [shape: bf16[128,128], index: 1, kind: input, shape index: {}]   ;;  %s2059_s2 = inlined_call_operand.vmem [shape: f32[1,128], index: 2, kind: input, shape index: {}]   ;;  %s2060_s0 = inlined_call_operand.vmem [shape: bf16[200,128], index: 0, kind: input, shape index: {}]   ;;  %s2061_s3 = inlined_call_operand.vmem [shape: bf16[128,128], index: 3, kind: input, shape index: {}]   ;;  %s2062_s4 = inlined_call_operand.vmem [shape: f32[1,128], index: 4, kind: input, shape index: {}]   ;;  %s2063_s5 = inlined_call_operand.vmem [shape: bf16[128,128], index: 5, kind: input, shape index: {}]   ;;  %s2064_s6 = inlined_call_operand.vmem [shape: f32[1,128], index: 6, kind: input, shape index: {}]   ;;  %s2065_s7 = inlined_call_operand.vmem [shape: f32[200,128], index: 7, kind: output, shape index: {}]  }
   0x1   :  { %v1368_v0 = vld [vmem:[%s2058_s1 + $0x38] sm:$0xff]  ;;  %v1367_v1 = vld [vmem:[%s2058_s1 + $0x30] sm:$0xff]  ;;  %v1366_v2 = vld [vmem:[%s2058_s1 + $0x28] sm:$0xff] }
   0x2   :  { %195 = vmatpush.bf16.msra.mxu0 %v1368_v0  ;;  %1385 = vmatpush.bf16.msra.mxu3 %v1368_v0  ;;  %v1365_v3 = vld [vmem:[%s2058_s1 + $0x20] sm:$0xff]  ;;  %v1364_v4 = vld [vmem:[%s2058_s1 + $0x18] sm:$0xff]  ;;  %v1363_v5 = vld [vmem:[%s2058_s1 + $0x10] sm:$0xff] }
   0x3   :  { %v1362_v6 = vld [vmem:[%s2058_s1 + $0x8] sm:$0xff]  ;;  %v1361_v7 = vld [vmem:[%s2058_s1] sm:$0xff]  ;;  %v1359_v9 = vld [vmem:[%s2060_s0 + $0x50] sm:$0xff] }
   0x4   :  { %v1349_v8 = vld [vmem:[%s2060_s0] sm:$0xff]  ;;  %v1350_v10 = vld [vmem:[%s2060_s0 + $0x8] sm:$0xff]  ;;  %v1360_v11 = vld [vmem:[%s2060_s0 + $0x58] sm:$0xff] }
   0x5   :  { %v50_v12 = vld [vmem:[%s2060_s0 + $0x60] sm:$0xf]  ;;  %v1351_v14 = vld [vmem:[%s2060_s0 + $0x10] sm:$0xff]  ;;  %v1352_v16 = vld [vmem:[%s2060_s0 + $0x18] sm:$0xff] }
   0x6   :  { %196 = vmatpush.bf16.msra.mxu0 %v1367_v1  ;;  %1386 = vmatpush.bf16.msra.mxu3 %v1367_v1  ;;  %v120_v13 = vunpack.c.l.b16 %v50_v12  ;;  %v1353_v17 = vld [vmem:[%s2060_s0 + $0x20] sm:$0xff]  ;;  %v1376_v18 = vld [vmem:[%s2061_s3 + $0x38] sm:$0xff]  ;;  %v1354_v19 = vld [vmem:[%s2060_s0 + $0x28] sm:$0xff] }
   0x7   :  { %374 = vmatpush.bf16.msra.mxu1 %v1376_v18  ;;  %v1375_v20 = vld [vmem:[%s2061_s3 + $0x30] sm:$0xff]  ;;  %v1374_v21 = vld [vmem:[%s2061_s3 + $0x28] sm:$0xff]  ;;  %v1373_v22 = vld [vmem:[%s2061_s3 + $0x20] sm:$0xff] }
   0x8   :  { %v133_v15 = vpack.c.b16 %v120_v13, %v120_v13  ;;  %v1372_v23 = vld [vmem:[%s2061_s3 + $0x18] sm:$0xff]  ;;  %v1355_v24 = vld [vmem:[%s2060_s0 + $0x30] sm:$0xff]  ;;  %v1370_v26 = vld [vmem:[%s2061_s3 + $0x8] sm:$0xff] }
   0x9   :  { %v1371_v25 = vld [vmem:[%s2061_s3 + $0x10] sm:$0xff]  ;;  %v1369_v27 = vld [vmem:[%s2061_s3] sm:$0xff]  ;;  %v1356_v28 = vld [vmem:[%s2060_s0 + $0x38] sm:$0xff] }
   0xa   :  { %197 = vmatpush.bf16.msra.mxu0 %v1366_v2  ;;  %1387 = vmatpush.bf16.msra.mxu3 %v1366_v2  ;;  %v1357_v29 = vld [vmem:[%s2060_s0 + $0x40] sm:$0xff]  ;;  %v1358_v43 = vld [vmem:[%s2060_s0 + $0x48] sm:$0xff] }
   0xb   :  { %375 = vmatpush.bf16.msra.mxu1 %v1375_v20  ;;  %v1639_v31 = vld [vmem:[%s2059_s2] ss:$0 sm:$0xff] }
   0xe   :  { %198 = vmatpush.bf16.msra.mxu0 %v1365_v3  ;;  %1388 = vmatpush.bf16.msra.mxu3 %v1365_v3 }
   0xf   :  { %376 = vmatpush.bf16.msra.mxu1 %v1374_v21 }
  0x12   :  { %199 = vmatpush.bf16.msra.mxu0 %v1364_v4  ;;  %1389 = vmatpush.bf16.msra.mxu3 %v1364_v4 }
  0x13   :  { %377 = vmatpush.bf16.msra.mxu1 %v1373_v22 }
  0x16   :  { %200 = vmatpush.bf16.msra.mxu0 %v1363_v5  ;;  %1390 = vmatpush.bf16.msra.mxu3 %v1363_v5 }
  0x17   :  { %378 = vmatpush.bf16.msra.mxu1 %v1372_v23 }
  0x1a   :  { %201 = vmatpush.bf16.msra.mxu0 %v1362_v6  ;;  %1391 = vmatpush.bf16.msra.mxu3 %v1362_v6 }
  0x1b   :  { %379 = vmatpush.bf16.msra.mxu1 %v1371_v25 }
  0x1e   :  { %202 = vmatpush.bf16.msra.mxu0 %v1361_v7  ;;  %1392 = vmatpush.bf16.msra.mxu3 %v1361_v7 }
  0x1f   :  { %380 = vmatpush.bf16.msra.mxu1 %v1370_v26 }
  0x21   :  { %203 = vmatmul.bf16.vlgmr.msra.gmra.mxu0 %v1349_v8  ;;  %253 = vmatmul.bf16.vlgmr.msra.gmra.mxu3 %v1359_v9 }
  0x22   :  { %1393 = vmatpush.bf16.msrb.mxu3 %v1376_v18 }
  0x23   :  { %381 = vmatpush.bf16.msra.mxu1 %v1369_v27 }
  0x26   :  { %1394 = vmatpush.bf16.msrb.mxu3 %v1375_v20 }
  0x2a   :  { %1395 = vmatpush.bf16.msrb.mxu3 %v1374_v21 }
  0x2e   :  { %1396 = vmatpush.bf16.msrb.mxu3 %v1373_v22 }
  0x31   :  { %208 = vmatmul.bf16.gmra.mxu0 %v1350_v10  ;;  %258 = vmatmul.bf16.gmra.mxu3 %v1360_v11 }
  0x32   :  { %1397 = vmatpush.bf16.msrb.mxu3 %v1372_v23 }
  0x36   :  { %1398 = vmatpush.bf16.msrb.mxu3 %v1371_v25 }
  0x3a   :  { %1399 = vmatpush.bf16.msrb.mxu3 %v1370_v26 }
  0x3e   :  { %1400 = vmatpush.bf16.msrb.mxu3 %v1369_v27  ;;  %v1384_v27 = vld [vmem:[%s2063_s5 + $0x38] sm:$0xff] }
  0x3f   :  { %553 = vmatpush.bf16.msra.mxu2 %v1384_v27 }
  0x41   :  { %213 = vmatmul.bf16.gmra.mxu0 %v1351_v14  ;;  %263 = vmatmul.bf16.gmra.mxu3 %v133_v15 }
  0x42   :  { %1401 = vmatpush.bf16.msra.mxu3 %v1384_v27 }
  0x51   :  { %218 = vmatmul.bf16.gmra.mxu0 %v1352_v16 }
  0x61   :  { %223 = vmatmul.bf16.gmra.mxu0 %v1353_v17 }
  0x71   :  { %228 = vmatmul.bf16.gmra.mxu0 %v1354_v19 }
  0x81   :  { %233 = vmatmul.bf16.gmra.mxu0 %v1355_v24 }
  0x91   :  { %238 = vmatmul.bf16.gmra.mxu0 %v1356_v28 }
  0x9e   :  { %v204_v30 = vpop.f32.mrf.mxu0 }
  0x9f   :  { %v205_v33 = vadd.f32 %v1639_v31, %v204_v30  ;;  %v1383_v30 = vld [vmem:[%s2063_s5 + $0x30] sm:$0xff] }
  0xa0   :  { %554 = vmatpush.bf16.msra.mxu2 %v1383_v30  ;;  %1402 = vmatpush.bf16.msra.mxu3 %v1383_v30 }
  0xa1   :  { %243 = vmatmul.bf16.gmra.mxu0 %v1357_v29  ;;  %v268_v36 = vmax.f32 %v205_v33, 0.0  ;;  %v1382_v33 = vld [vmem:[%s2063_s5 + $0x28] sm:$0xff] }
  0xa4   :  { %v254_v32 = vpop.f32.mrf.mxu3  ;;  %555 = vmatpush.bf16.msra.mxu2 %v1382_v33  ;;  %1403 = vmatpush.bf16.msra.mxu3 %v1382_v33 }
  0xa5   :  { %v255_v37 = vadd.f32 %v1639_v31, %v254_v32 }
  0xa6   :  { %v206_v34 = vpop.f32.mrf.mxu0 }
  0xa7   :  { %v207_v35 = vadd.f32 %v1639_v31, %v206_v34  ;;  %v288_v41 = vmax.f32 %v255_v37, 0.0 }
  0xa9   :  { %v269_v38 = vmax.f32 %v207_v35, 0.0  ;;  %v1381_v35 = vld [vmem:[%s2063_s5 + $0x20] sm:$0xff] }
  0xaa   :  { %556 = vmatpush.bf16.msra.mxu2 %v1381_v35  ;;  %1404 = vmatpush.bf16.msra.mxu3 %v1381_v35 }
  0xab   :  { %v293_v39 = vpack.c.bf16 %v269_v38, %v268_v36 }
  0xac   :  { %v256_v40 = vpop.f32.mrf.mxu3 }
  0xad   :  { %v257_v42 = vadd.f32 %v1639_v31, %v256_v40  ;;  %382 = vmatmul.bf16.vlgmr.msra.gmra.mxu1 %v293_v39  ;;  %v1380_v39 = vld [vmem:[%s2063_s5 + $0x18] sm:$0xff] }
  0xae   :  { %v209_v44 = vpop.f32.mrf.mxu0  ;;  %557 = vmatpush.bf16.msra.mxu2 %v1380_v39  ;;  %1405 = vmatpush.bf16.msra.mxu3 %v1380_v39 }
  0xaf   :  { %v289_v45 = vmax.f32 %v257_v42, 0.0  ;;  %v210_v48 = vadd.f32 %v1639_v31, %v209_v44  ;;  %v1379_v42 = vld [vmem:[%s2063_s5 + $0x10] sm:$0xff]  ;;  %v1378_v44 = vld [vmem:[%s2063_s5 + $0x8] sm:$0xff] }
  0xb1   :  { %v303_v46 = vpack.c.bf16 %v289_v45, %v288_v41  ;;  %248 = vmatmul.bf16.gmra.mxu0 %v1358_v43  ;;  %v270_v51 = vmax.f32 %v210_v48, 0.0 }
  0xb2   :  { %558 = vmatpush.bf16.msra.mxu2 %v1379_v42  ;;  %1406 = vmatpush.bf16.msra.mxu3 %v1379_v42 }
  0xb3   :  { %432 = vmatmul.bf16.vlgmr.msrb.gmra.mxu3 %v303_v46  ;;  %v1377_v46 = vld [vmem:[%s2063_s5] sm:$0xff] }
  0xb4   :  { %v259_v47 = vpop.f32.mrf.mxu3 }
  0xb5   :  { %v260_v52 = vadd.f32 %v1639_v31, %v259_v47 }
  0xb6   :  { %v211_v49 = vpop.f32.mrf.mxu0  ;;  %559 = vmatpush.bf16.msra.mxu2 %v1378_v44  ;;  %1407 = vmatpush.bf16.msra.mxu3 %v1378_v44 }
  0xb7   :  { %v212_v50 = vadd.f32 %v1639_v31, %v211_v49  ;;  %v290_v56 = vmax.f32 %v260_v52, 0.0 }
  0xb9   :  { %v271_v53 = vmax.f32 %v212_v50, 0.0 }
  0xba   :  { %560 = vmatpush.bf16.msra.mxu2 %v1377_v46  ;;  %1408 = vmatpush.bf16.msra.mxu3 %v1377_v46 }
  0xbb   :  { %v294_v54 = vpack.c.bf16 %v271_v53, %v270_v51 }
  0xbc   :  { %v261_v55 = vpop.f32.mrf.mxu3 }
  0xbd   :  { %v262_v57 = vadd.f32 %v1639_v31, %v261_v55  ;;  %387 = vmatmul.bf16.gmra.mxu1 %v294_v54 }
  0xbe   :  { %v214_v58 = vpop.f32.mrf.mxu0 }
  0xbf   :  { %v291_v59 = vmax.f32 %v262_v57, 0.0  ;;  %v215_v61 = vadd.f32 %v1639_v31, %v214_v58 }
  0xc1   :  { %v304_v60 = vpack.c.bf16 %v291_v59, %v290_v56  ;;  %v272_v0 = vmax.f32 %v215_v61, 0.0 }
  0xc3   :  { %437 = vmatmul.bf16.gmra.mxu3 %v304_v60  ;;  %v1694_v60 = vld [vmem:[%s2062_s4] ss:$0 sm:$0xff] }
  0xc4   :  { %v264_v62 = vpop.f32.mrf.mxu3 }
  0xc5   :  { %v265_v2 = vadd.f32 %v1639_v31, %v264_v62 }
  0xc6   :  { %v216_v63 = vpop.f32.mrf.mxu0 }
  0xc7   :  { %v217_v1 = vadd.f32 %v1639_v31, %v216_v63  ;;  %v292_v5 = vmax.f32 %v265_v2, 0.0 }
  0xc9   :  { %v273_v3 = vmax.f32 %v217_v1, 0.0  ;;  %v305_v8 = vpack.c.bf16 %v292_v5, %v292_v5 }
  0xcb   :  { %v295_v4 = vpack.c.bf16 %v273_v3, %v272_v0 }
  0xcc   :  { %v266_v6 = vpop.f32.mrf.mxu3 }
  0xcd   :  { %392 = vmatmul.bf16.gmra.mxu1 %v295_v4 }
  0xce   :  { %v219_v7 = vpop.f32.mrf.mxu0 }
  0xcf   :  { %v220_v9 = vadd.f32 %v1639_v31, %v219_v7 }
  0xd1   :  { %v274_v11 = vmax.f32 %v220_v9, 0.0 }
  0xd3   :  { %442 = vmatmul.bf16.gmra.mxu3 %v305_v8 }
  0xd6   :  { %v221_v10 = vpop.f32.mrf.mxu0 }
  0xd7   :  { %v222_v12 = vadd.f32 %v1639_v31, %v221_v10 }
  0xd9   :  { %v275_v13 = vmax.f32 %v222_v12, 0.0 }
  0xdb   :  { %v296_v14 = vpack.c.bf16 %v275_v13, %v274_v11 }
  0xdd   :  { %397 = vmatmul.bf16.gmra.mxu1 %v296_v14 }
  0xde   :  { %v224_v15 = vpop.f32.mrf.mxu0 }
  0xdf   :  { %v225_v16 = vadd.f32 %v1639_v31, %v224_v15 }
  0xe1   :  { %v276_v18 = vmax.f32 %v225_v16, 0.0 }
  0xe6   :  { %v226_v17 = vpop.f32.mrf.mxu0 }
  0xe7   :  { %v227_v19 = vadd.f32 %v1639_v31, %v226_v17 }
  0xe9   :  { %v277_v20 = vmax.f32 %v227_v19, 0.0 }
  0xeb   :  { %v297_v21 = vpack.c.bf16 %v277_v20, %v276_v18 }
  0xed   :  { %402 = vmatmul.bf16.gmra.mxu1 %v297_v21 }
  0xee   :  { %v229_v22 = vpop.f32.mrf.mxu0 }
  0xef   :  { %v230_v23 = vadd.f32 %v1639_v31, %v229_v22 }
  0xf1   :  { %v278_v25 = vmax.f32 %v230_v23, 0.0 }
  0xf6   :  { %v231_v24 = vpop.f32.mrf.mxu0 }
  0xf7   :  { %v232_v26 = vadd.f32 %v1639_v31, %v231_v24 }
  0xf9   :  { %v279_v28 = vmax.f32 %v232_v26, 0.0 }
  0xfb   :  { %v298_v29 = vpack.c.bf16 %v279_v28, %v278_v25 }
  0xfd   :  { %407 = vmatmul.bf16.gmra.mxu1 %v298_v29 }
  0xfe   :  { %v234_v32 = vpop.f32.mrf.mxu0 }
  0xff   :  { %v235_v34 = vadd.f32 %v1639_v31, %v234_v32 }
 0x101   :  { %v280_v37 = vmax.f32 %v235_v34, 0.0 }
 0x106   :  { %v236_v36 = vpop.f32.mrf.mxu0 }
 0x107   :  { %v237_v38 = vadd.f32 %v1639_v31, %v236_v36 }
 0x109   :  { %v281_v40 = vmax.f32 %v237_v38, 0.0 }
 0x10b   :  { %v299_v41 = vpack.c.bf16 %v281_v40, %v280_v37 }
 0x10d   :  { %412 = vmatmul.bf16.gmra.mxu1 %v299_v41 }
 0x10e   :  { %v239_v43 = vpop.f32.mrf.mxu0 }
 0x10f   :  { %v240_v45 = vadd.f32 %v1639_v31, %v239_v43 }
 0x111   :  { %v282_v48 = vmax.f32 %v240_v45, 0.0 }
 0x116   :  { %v241_v47 = vpop.f32.mrf.mxu0 }
 0x117   :  { %v242_v49 = vadd.f32 %v1639_v31, %v241_v47 }
 0x119   :  { %v283_v50 = vmax.f32 %v242_v49, 0.0 }
 0x11b   :  { %v300_v51 = vpack.c.bf16 %v283_v50, %v282_v48 }
 0x11d   :  { %417 = vmatmul.bf16.gmra.mxu1 %v300_v51 }
 0x11e   :  { %v244_v52 = vpop.f32.mrf.mxu0 }
 0x11f   :  { %v245_v53 = vadd.f32 %v1639_v31, %v244_v52 }
 0x121   :  { %v284_v55 = vmax.f32 %v245_v53, 0.0 }
 0x126   :  { %v246_v54 = vpop.f32.mrf.mxu0 }
 0x127   :  { %v247_v56 = vadd.f32 %v1639_v31, %v246_v54 }
 0x129   :  { %v285_v57 = vmax.f32 %v247_v56, 0.0 }
 0x12a   :  { %v383_v58 = vpop.f32.mrf.mxu1 }
 0x12b   :  { %v301_v59 = vpack.c.bf16 %v285_v57, %v284_v55  ;;  %v384_v62 = vadd.f32 %v1694_v60, %v383_v58 }
 0x12d   :  { %422 = vmatmul.bf16.gmra.mxu1 %v301_v59  ;;  %v447_v2 = vmax.f32 %v384_v62, 0.0 }
 0x12e   :  { %v249_v61 = vpop.f32.mrf.mxu0 }
 0x12f   :  { %v250_v0 = vadd.f32 %v1639_v31, %v249_v61 }
 0x131   :  { %v286_v6 = vmax.f32 %v250_v0, 0.0 }
 0x132   :  { %v385_v63 = vpop.f32.mrf.mxu1 }
 0x133   :  { %v386_v1 = vadd.f32 %v1694_v60, %v385_v63 }
 0x135   :  { %v448_v3 = vmax.f32 %v386_v1, 0.0 }
 0x136   :  { %v251_v4 = vpop.f32.mrf.mxu0  ;;  %v433_v5 = vpop.f32.mrf.mxu3 }
 0x137   :  { %v252_v7 = vadd.f32 %v1639_v31, %v251_v4  ;;  %v472_v8 = vpack.c.bf16 %v448_v3, %v447_v2  ;;  %v434_v11 = vadd.f32 %v1694_v60, %v433_v5 }
 0x139   :  { %v287_v9 = vmax.f32 %v252_v7, 0.0  ;;  %561 = vmatmul.bf16.vlgmr.msra.gmra.mxu2 %v472_v8  ;;  %v467_v14 = vmax.f32 %v434_v11, 0.0 }
 0x13a   :  { %v388_v10 = vpop.f32.mrf.mxu1 }
 0x13b   :  { %v302_v12 = vpack.c.bf16 %v287_v9, %v286_v6  ;;  %v389_v16 = vadd.f32 %v1694_v60, %v388_v10 }
 0x13d   :  { %427 = vmatmul.bf16.gmra.mxu1 %v302_v12  ;;  %v449_v31 = vmax.f32 %v389_v16, 0.0 }
 0x13e   :  { %v435_v13 = vpop.f32.mrf.mxu3 }
 0x13f   :  { %v436_v15 = vadd.f32 %v1694_v60, %v435_v13 }
 0x141   :  { %v468_v17 = vmax.f32 %v436_v15, 0.0 }
 0x142   :  { %v390_v18 = vpop.f32.mrf.mxu1 }
 0x143   :  { %v482_v19 = vpack.c.bf16 %v468_v17, %v467_v14  ;;  %v391_v20 = vadd.f32 %v1694_v60, %v390_v18 }
 0x145   :  { %v450_v21 = vmax.f32 %v391_v20, 0.0  ;;  %611 = vmatmul.bf16.vlgmr.msra.gmra.mxu3 %v482_v19 }
 0x146   :  { %v438_v22 = vpop.f32.mrf.mxu3 }
 0x147   :  { %v473_v23 = vpack.c.bf16 %v450_v21, %v449_v31  ;;  %v439_v25 = vadd.f32 %v1694_v60, %v438_v22  ;;  %v1724_v21 = vld [vmem:[%s2064_s6] ss:$0 sm:$0xff] }
 0x149   :  { %566 = vmatmul.bf16.gmra.mxu2 %v473_v23  ;;  %v469_v27 = vmax.f32 %v439_v25, 0.0 }
 0x14a   :  { %v393_v24 = vpop.f32.mrf.mxu1 }
 0x14b   :  { %v394_v29 = vadd.f32 %v1694_v60, %v393_v24 }
 0x14d   :  { %v451_v35 = vmax.f32 %v394_v29, 0.0 }
 0x14e   :  { %v440_v26 = vpop.f32.mrf.mxu3 }
 0x14f   :  { %v441_v28 = vadd.f32 %v1694_v60, %v440_v26 }
 0x151   :  { %v470_v30 = vmax.f32 %v441_v28, 0.0 }
 0x152   :  { %v395_v32 = vpop.f32.mrf.mxu1 }
 0x153   :  { %v396_v33 = vadd.f32 %v1694_v60, %v395_v32  ;;  %v483_v34 = vpack.c.bf16 %v470_v30, %v469_v27 }
 0x155   :  { %v452_v36 = vmax.f32 %v396_v33, 0.0  ;;  %616 = vmatmul.bf16.gmra.mxu3 %v483_v34 }
 0x156   :  { %v443_v37 = vpop.f32.mrf.mxu3 }
 0x157   :  { %v474_v38 = vpack.c.bf16 %v452_v36, %v451_v35  ;;  %v444_v39 = vadd.f32 %v1694_v60, %v443_v37 }
 0x159   :  { %571 = vmatmul.bf16.gmra.mxu2 %v474_v38  ;;  %v471_v41 = vmax.f32 %v444_v39, 0.0 }
 0x15a   :  { %v398_v40 = vpop.f32.mrf.mxu1 }
 0x15b   :  { %v399_v43 = vadd.f32 %v1694_v60, %v398_v40  ;;  %v484_v44 = vpack.c.bf16 %v471_v41, %v471_v41 }
 0x15d   :  { %v453_v47 = vmax.f32 %v399_v43, 0.0 }
 0x15e   :  { %v445_v42 = vpop.f32.mrf.mxu3 }
 0x162   :  { %v400_v45 = vpop.f32.mrf.mxu1 }
 0x163   :  { %v401_v46 = vadd.f32 %v1694_v60, %v400_v45 }
 0x165   :  { %v454_v48 = vmax.f32 %v401_v46, 0.0  ;;  %621 = vmatmul.bf16.gmra.mxu3 %v484_v44 }
 0x167   :  { %v475_v49 = vpack.c.bf16 %v454_v48, %v453_v47 }
 0x169   :  { %576 = vmatmul.bf16.gmra.mxu2 %v475_v49 }
 0x16a   :  { %v403_v50 = vpop.f32.mrf.mxu1 }
 0x16b   :  { %v404_v51 = vadd.f32 %v1694_v60, %v403_v50 }
 0x16d   :  { %v455_v54 = vmax.f32 %v404_v51, 0.0 }
 0x172   :  { %v405_v52 = vpop.f32.mrf.mxu1 }
 0x173   :  { %v406_v53 = vadd.f32 %v1694_v60, %v405_v52 }
 0x175   :  { %v456_v55 = vmax.f32 %v406_v53, 0.0 }
 0x177   :  { %v476_v56 = vpack.c.bf16 %v456_v55, %v455_v54 }
 0x179   :  { %581 = vmatmul.bf16.gmra.mxu2 %v476_v56 }
 0x17a   :  { %v408_v57 = vpop.f32.mrf.mxu1 }
 0x17b   :  { %v409_v58 = vadd.f32 %v1694_v60, %v408_v57 }
 0x17d   :  { %v457_v62 = vmax.f32 %v409_v58, 0.0 }
 0x182   :  { %v410_v59 = vpop.f32.mrf.mxu1 }
 0x183   :  { %v411_v61 = vadd.f32 %v1694_v60, %v410_v59 }
 0x185   :  { %v458_v63 = vmax.f32 %v411_v61, 0.0 }
 0x187   :  { %v477_v0 = vpack.c.bf16 %v458_v63, %v457_v62 }
 0x189   :  { %586 = vmatmul.bf16.gmra.mxu2 %v477_v0 }
 0x18a   :  { %v413_v1 = vpop.f32.mrf.mxu1 }
 0x18b   :  { %v414_v2 = vadd.f32 %v1694_v60, %v413_v1 }
 0x18d   :  { %v459_v5 = vmax.f32 %v414_v2, 0.0 }
 0x192   :  { %v415_v3 = vpop.f32.mrf.mxu1 }
 0x193   :  { %v416_v4 = vadd.f32 %v1694_v60, %v415_v3 }
 0x195   :  { %v460_v6 = vmax.f32 %v416_v4, 0.0 }
 0x197   :  { %v478_v7 = vpack.c.bf16 %v460_v6, %v459_v5 }
 0x199   :  { %591 = vmatmul.bf16.gmra.mxu2 %v478_v7 }
 0x19a   :  { %v418_v8 = vpop.f32.mrf.mxu1 }
 0x19b   :  { %v419_v9 = vadd.f32 %v1694_v60, %v418_v8 }
 0x19d   :  { %v461_v12 = vmax.f32 %v419_v9, 0.0 }
 0x1a2   :  { %v420_v10 = vpop.f32.mrf.mxu1 }
 0x1a3   :  { %v421_v11 = vadd.f32 %v1694_v60, %v420_v10 }
 0x1a5   :  { %v462_v13 = vmax.f32 %v421_v11, 0.0 }
 0x1a7   :  { %v479_v14 = vpack.c.bf16 %v462_v13, %v461_v12 }
 0x1a9   :  { %596 = vmatmul.bf16.gmra.mxu2 %v479_v14 }
 0x1aa   :  { %v423_v15 = vpop.f32.mrf.mxu1 }
 0x1ab   :  { %v424_v16 = vadd.f32 %v1694_v60, %v423_v15 }
 0x1ad   :  { %v463_v19 = vmax.f32 %v424_v16, 0.0 }
 0x1b2   :  { %v425_v17 = vpop.f32.mrf.mxu1 }
 0x1b3   :  { %v426_v18 = vadd.f32 %v1694_v60, %v425_v17 }
 0x1b5   :  { %v464_v20 = vmax.f32 %v426_v18, 0.0 }
 0x1b7   :  { %v480_v31 = vpack.c.bf16 %v464_v20, %v463_v19 }
 0x1b9   :  { %601 = vmatmul.bf16.gmra.mxu2 %v480_v31 }
 0x1ba   :  { %v428_v22 = vpop.f32.mrf.mxu1 }
 0x1bb   :  { %v429_v25 = vadd.f32 %v1694_v60, %v428_v22 }
 0x1bc   :  { %v562_v23 = vpop.f32.mrf.mxu2 }
 0x1bd   :  { %v1727_v24 = vadd.f32 %v1724_v21, %v562_v23  ;;  %v465_v29 = vmax.f32 %v429_v25, 0.0 }
 0x1bf   :  { %626 = vmax.xlane.f32.xlu0 %v1727_v24 }
 0x1c2   :  { %v430_v26 = vpop.f32.mrf.mxu1 }
 0x1c3   :  { %v431_v27 = vadd.f32 %v1694_v60, %v430_v26 }
 0x1c4   :  { %v564_v28 = vpop.f32.mrf.mxu2 }
 0x1c5   :  { %v466_v30 = vmax.f32 %v431_v27, 0.0  ;;  %v1733_v32 = vadd.f32 %v1724_v21, %v564_v28 }
 0x1c7   :  { %628 = vmax.xlane.f32.xlu0 %v1733_v32  ;;  %v481_v33 = vpack.c.bf16 %v466_v30, %v465_v29 }
 0x1c8   :  { %v612_v34 = vpop.f32.mrf.mxu3 }
 0x1c9   :  { %v1737_v35 = vadd.f32 %v1724_v21, %v612_v34  ;;  %606 = vmatmul.bf16.gmra.mxu2 %v481_v33 }
 0x1cb   :  { %666 = vmax.xlane.f32.xlu2 %v1737_v35 }
 0x1cc   :  { %v567_v36 = vpop.f32.mrf.mxu2 }
 0x1cd   :  { %v1741_v37 = vadd.f32 %v1724_v21, %v567_v36 }
 0x1cf   :  { %630 = vmax.xlane.f32.xlu1 %v1741_v37 }
 0x1d0   :  { %v614_v60 = vpop.f32.mrf.mxu3 }
 0x1d1   :  { %v1745_v38 = vadd.f32 %v1724_v21, %v614_v60 }
 0x1d3   :  { %668 = vmax.xlane.f32.xlu0 %v1745_v38 }
 0x1d4   :  { %v569_v39 = vpop.f32.mrf.mxu2 }
 0x1d5   :  { %v1749_v40 = vadd.f32 %v1724_v21, %v569_v39 }
 0x1d7   :  { %632 = vmax.xlane.f32.xlu1 %v1749_v40 }
 0x1d8   :  { %v617_v41 = vpop.f32.mrf.mxu3 }
 0x1d9   :  { %v1753_v42 = vadd.f32 %v1724_v21, %v617_v41 }
 0x1dc   :  { %v572_v43 = vpop.f32.mrf.mxu2 }
 0x1dd   :  { %v1756_v44 = vadd.f32 %v1724_v21, %v572_v43 }
 0x1df   :  { %634 = vmax.xlane.f32.xlu2 %v1756_v44  ;;  %670 = vmax.xlane.f32.xlu1 %v1753_v42 }
 0x1e0   :  { %v619_v45 = vpop.f32.mrf.mxu3 }
 0x1e1   :  { %v1761_v46 = vadd.f32 %v1724_v21, %v619_v45 }
 0x1e4   :  { %v574_v47 = vpop.f32.mrf.mxu2 }
 0x1e5   :  { %v1769_v51 = vadd.f32 %v1724_v21, %v574_v47 }
 0x1e7   :  { %672 = vmax.xlane.f32.xlu2 %v1761_v46 }
 0x1e8   :  { %v622_v48 = vpop.f32.mrf.mxu3 }
 0x1e9   :  { %v1765_v49 = vadd.f32 %v1724_v21, %v622_v48 }
 0x1eb   :  { %674 = vmax.xlane.f32.xlu0 %v1765_v49 }
 0x1ec   :  { %v577_v50 = vpop.f32.mrf.mxu2 }
 0x1ed   :  { %v1773_v53 = vadd.f32 %v1724_v21, %v577_v50 }
 0x1ef   :  { %636 = vmax.xlane.f32.xlu2 %v1769_v51 }
 0x1f0   :  { %v624_v52 = vpop.f32.mrf.mxu3 }
 0x1f3   :  { %638 = vmax.xlane.f32.xlu0 %v1773_v53 }
 0x1f4   :  { %v579_v54 = vpop.f32.mrf.mxu2 }
 0x1f5   :  { %v1777_v55 = vadd.f32 %v1724_v21, %v579_v54 }
 0x1f7   :  { %640 = vmax.xlane.f32.xlu1 %v1777_v55 }
 0x1fc   :  { %v582_v56 = vpop.f32.mrf.mxu2 }
 0x1fd   :  { %v1781_v57 = vadd.f32 %v1724_v21, %v582_v56 }
 0x1ff   :  { %642 = vmax.xlane.f32.xlu2 %v1781_v57 }
 0x204   :  { %v584_v58 = vpop.f32.mrf.mxu2 }
 0x205   :  { %v1785_v59 = vadd.f32 %v1724_v21, %v584_v58 }
 0x207   :  { %644 = vmax.xlane.f32.xlu0 %v1785_v59 }
 0x20c   :  { %v587_v61 = vpop.f32.mrf.mxu2 }
 0x20d   :  { %v1789_v62 = vadd.f32 %v1724_v21, %v587_v61 }
 0x20f   :  { %646 = vmax.xlane.f32.xlu1 %v1789_v62 }
 0x214   :  { %v589_v63 = vpop.f32.mrf.mxu2 }
 0x215   :  { %v1793_v0 = vadd.f32 %v1724_v21, %v589_v63 }
 0x217   :  { %648 = vmax.xlane.f32.xlu2 %v1793_v0 }
 0x21c   :  { %v592_v1 = vpop.f32.mrf.mxu2 }
 0x21d   :  { %v1797_v2 = vadd.f32 %v1724_v21, %v592_v1 }
 0x21f   :  { %650 = vmax.xlane.f32.xlu0 %v1797_v2 }
 0x224   :  { %v594_v3 = vpop.f32.mrf.mxu2 }
 0x225   :  { %v1801_v4 = vadd.f32 %v1724_v21, %v594_v3 }
 0x227   :  { %652 = vmax.xlane.f32.xlu1 %v1801_v4 }
 0x22c   :  { %v597_v5 = vpop.f32.mrf.mxu2 }
 0x22d   :  { %v1805_v6 = vadd.f32 %v1724_v21, %v597_v5 }
 0x22f   :  { %654 = vmax.xlane.f32.xlu2 %v1805_v6 }
 0x232   :  { %v627_v7 = vpop.xlane.xlu0 %626 }
 0x233   :  { %v676_v8 = vsub.f32 %v1727_v24, %v627_v7 }
 0x234   :  { %v599_v9 = vpop.f32.mrf.mxu2 }
 0x235   :  { %v701_v10 = vmul.f32 1.442695, %v676_v8  ;;  %v1810_v11 = vadd.f32 %v1724_v21, %v599_v9 }
 0x237   :  { %1412 = vpow2.f32 %v701_v10  ;;  %656 = vmax.xlane.f32.xlu0 %v1810_v11 }
 0x23a   :  { %v629_v12 = vpop.xlane.xlu0 %628 }
 0x23b   :  { %v677_v13 = vsub.f32 %v1733_v32, %v629_v12 }
 0x23c   :  { %v602_v14 = vpop.f32.mrf.mxu2 }
 0x23d   :  { %v1814_v15 = vpop.eup %1412  ;;  %v703_v16 = vmul.f32 1.442695, %v677_v13  ;;  %v1819_v19 = vadd.f32 %v1724_v21, %v602_v14 }
 0x23e   :  { %751 = vadd.xlane.f32.xlu1 %v1814_v15  ;;  %v667_v23 = vpop.xlane.xlu2 %666 }
 0x23f   :  { %1414 = vpow2.f32 %v703_v16  ;;  %v696_v29 = vsub.f32 %v1737_v35, %v667_v23 }
 0x241   :  { %v741_v32 = vmul.f32 1.442695, %v696_v29 }
 0x242   :  { %v631_v17 = vpop.xlane.xlu1 %630 }
 0x243   :  { %v678_v18 = vsub.f32 %v1741_v37, %v631_v17 }
 0x244   :  { %v604_v22 = vpop.f32.mrf.mxu2 }
 0x245   :  { %v1821_v20 = vpop.eup %1414  ;;  %v705_v31 = vmul.f32 1.442695, %v678_v18  ;;  %v1827_v26 = vadd.f32 %v1724_v21, %v604_v22 }
 0x246   :  { %658 = vmax.xlane.f32.xlu1 %v1819_v19  ;;  %753 = vadd.xlane.f32.xlu2 %v1821_v20  ;;  %v669_v36 = vpop.xlane.xlu0 %668 }
 0x247   :  { %1416 = vpow2.f32 %v705_v31  ;;  %v697_v35 = vsub.f32 %v1745_v38, %v669_v36 }
 0x249   :  { %v743_v43 = vmul.f32 1.442695, %v697_v35 }
 0x24a   :  { %v633_v24 = vpop.xlane.xlu1 %632 }
 0x24b   :  { %v679_v25 = vsub.f32 %v1749_v40, %v633_v24 }
 0x24c   :  { %v607_v30 = vpop.f32.mrf.mxu2 }
 0x24d   :  { %v1829_v27 = vpop.eup %1416  ;;  %v707_v28 = vmul.f32 1.442695, %v679_v25  ;;  %v1836_v37 = vadd.f32 %v1724_v21, %v607_v30 }
 0x24e   :  { %755 = vadd.xlane.f32.xlu0 %v1829_v27  ;;  %660 = vmax.xlane.f32.xlu2 %v1827_v26 }
 0x24f   :  { %1418 = vpow2.f32 %v707_v28 }
 0x250   :  { %1420 = vpow2.f32 %v741_v32 }
 0x252   :  { %v635_v33 = vpop.xlane.xlu2 %634  ;;  %v1857_v38 = vpop.xlane.xlu1 %670 }
 0x253   :  { %v680_v34 = vsub.f32 %v1756_v44, %v635_v33 }
 0x254   :  { %v609_v40 = vpop.f32.mrf.mxu2 }
 0x255   :  { %v1838_v60 = vpop.eup %1418  ;;  %v709_v39 = vmul.f32 1.442695, %v680_v34  ;;  %v1848_v45 = vadd.f32 %v1724_v21, %v609_v40 }
 0x256   :  { %662 = vmax.xlane.f32.xlu0 %v1836_v37  ;;  %757 = vadd.xlane.f32.xlu1 %v1838_v60  ;;  %v1845_v44 = vpop.eup %1420 }
 0x257   :  { %1422 = vpow2.f32 %v709_v39 }
 0x258   :  { %1424 = vpow2.f32 %v743_v43 }
 0x25a   :  { %v1843_v41 = vpop.xlane.xlu2 %672 }
 0x25d   :  { %v1850_v47 = vpop.eup %1422 }
 0x25e   :  { %791 = vadd.xlane.f32.xlu0 %v1845_v44  ;;  %664 = vmax.xlane.f32.xlu1 %v1848_v45  ;;  %v1854_v48 = vpop.xlane.xlu0 %674  ;;  %v1860_v54 = vpop.eup %1424 }
 0x25f   :  { %759 = vadd.xlane.f32.xlu2 %v1850_v47 }
 0x262   :  { %v637_v50 = vpop.xlane.xlu2 %636 }
 0x263   :  { %v681_v52 = vsub.f32 %v1769_v51, %v637_v50 }
 0x265   :  { %v711_v21 = vmul.f32 1.442695, %v681_v52 }
 0x266   :  { %793 = vadd.xlane.f32.xlu1 %v1860_v54  ;;  %v639_v56 = vpop.xlane.xlu0 %638 }
 0x267   :  { %1426 = vpow2.f32 %v711_v21  ;;  %v682_v58 = vsub.f32 %v1773_v53, %v639_v56 }
 0x269   :  { %v713_v61 = vmul.f32 1.442695, %v682_v58 }
 0x26a   :  { %v641_v63 = vpop.xlane.xlu1 %640 }
 0x26b   :  { %1428 = vpow2.f32 %v713_v61  ;;  %v683_v1 = vsub.f32 %v1777_v55, %v641_v63 }
 0x26d   :  { %v1865_v3 = vpop.eup %1426  ;;  %v715_v5 = vmul.f32 1.442695, %v683_v1 }
 0x26e   :  { %761 = vadd.xlane.f32.xlu0 %v1865_v3 }
 0x26f   :  { %1430 = vpow2.f32 %v715_v5 }
 0x271   :  { %v1868_v51 = vpop.eup %1428 }
 0x272   :  { %v643_v7 = vpop.xlane.xlu2 %642  ;;  %763 = vadd.xlane.f32.xlu1 %v1868_v51 }
 0x273   :  { %v684_v8 = vsub.f32 %v1781_v57, %v643_v7 }
 0x275   :  { %v1872_v9 = vpop.eup %1430  ;;  %v717_v53 = vmul.f32 1.442695, %v684_v8 }
 0x276   :  { %765 = vadd.xlane.f32.xlu2 %v1872_v9 }
 0x277   :  { %1432 = vpow2.f32 %v717_v53 }
 0x27a   :  { %v645_v55 = vpop.xlane.xlu0 %644 }
 0x27b   :  { %v685_v10 = vsub.f32 %v1785_v59, %v645_v55 }
 0x27d   :  { %v1876_v12 = vpop.eup %1432  ;;  %v719_v13 = vmul.f32 1.442695, %v685_v10 }
 0x27e   :  { %767 = vadd.xlane.f32.xlu0 %v1876_v12 }
 0x27f   :  { %1434 = vpow2.f32 %v719_v13 }
 0x282   :  { %v647_v14 = vpop.xlane.xlu1 %646 }
 0x283   :  { %v686_v16 = vsub.f32 %v1789_v62, %v647_v14 }
 0x285   :  { %v1880_v17 = vpop.eup %1434  ;;  %v721_v57 = vmul.f32 1.442695, %v686_v16 }
 0x286   :  { %769 = vadd.xlane.f32.xlu1 %v1880_v17 }
 0x287   :  { %1436 = vpow2.f32 %v721_v57 }
 0x28a   :  { %v649_v18 = vpop.xlane.xlu2 %648 }
 0x28b   :  { %v687_v31 = vsub.f32 %v1793_v0, %v649_v18 }
 0x28d   :  { %v1884_v22 = vpop.eup %1436  ;;  %v723_v59 = vmul.f32 1.442695, %v687_v31 }
 0x28e   :  { %771 = vadd.xlane.f32.xlu2 %v1884_v22 }
 0x28f   :  { %1438 = vpow2.f32 %v723_v59 }
 0x292   :  { %v651_v23 = vpop.xlane.xlu0 %650 }
 0x293   :  { %v688_v24 = vsub.f32 %v1797_v2, %v651_v23 }
 0x295   :  { %v1888_v25 = vpop.eup %1438  ;;  %v725_v62 = vmul.f32 1.442695, %v688_v24 }
 0x296   :  { %773 = vadd.xlane.f32.xlu0 %v1888_v25 }
 0x297   :  { %1440 = vpow2.f32 %v725_v62 }
 0x29a   :  { %v653_v28 = vpop.xlane.xlu1 %652 }
 0x29b   :  { %v689_v29 = vsub.f32 %v1801_v4, %v653_v28 }
 0x29d   :  { %v1892_v30 = vpop.eup %1440  ;;  %v727_v0 = vmul.f32 1.442695, %v689_v29 }
 0x29e   :  { %775 = vadd.xlane.f32.xlu1 %v1892_v30 }
 0x29f   :  { %1442 = vpow2.f32 %v727_v0 }
 0x2a2   :  { %v655_v32 = vpop.xlane.xlu2 %654 }
 0x2a3   :  { %v690_v33 = vsub.f32 %v1805_v6, %v655_v32 }
 0x2a5   :  { %v1896_v34 = vpop.eup %1442  ;;  %v729_v2 = vmul.f32 1.442695, %v690_v33 }
 0x2a6   :  { %777 = vadd.xlane.f32.xlu2 %v1896_v34 }
 0x2a7   :  { %1444 = vpow2.f32 %v729_v2 }
 0x2aa   :  { %v657_v36 = vpop.xlane.xlu0 %656 }
 0x2ab   :  { %v691_v39 = vsub.f32 %v1810_v11, %v657_v36 }
 0x2ad   :  { %v1900_v35 = vpop.eup %1444  ;;  %v731_v4 = vmul.f32 1.442695, %v691_v39 }
 0x2ae   :  { %779 = vadd.xlane.f32.xlu0 %v1900_v35 }
 0x2af   :  { %1446 = vpow2.f32 %v731_v4 }
 0x2b1   :  { %v752_v40 = vpop.xlane.xlu1 %751 }
 0x2b2   :  { %1448 = vrcp.f32 %v752_v40  ;;  %v812_v58 = vand.u32 2147483648, %v752_v40  ;;  %v810_v1 = vand.u32 2147483647, %v752_v40  ;;  %vm806_vm1 = vweird.f32 %v752_v40 }
 0x2b4   :  { %v813_v8 = vor.u32 1.1754944e-38, %v812_v58  ;;  %vm811_vm3 = vcmp.eq.f32.partialorder %v810_v1, 8.507059e+37 }
 0x2b5   :  { %v1903_v43 = vpop.eup %1446 }
 0x2b6   :  { %781 = vadd.xlane.f32.xlu1 %v1903_v43 }
 0x2b8   :  { %v1449_v6 = vpop.eup %1448 }
 0x2b9   :  { %v802_v50 = vmul.f32 %v1449_v6, %v752_v40  ;;  %v659_v52 = vpop.xlane.xlu1 %658  ;;  %v754_v21 = vpop.xlane.xlu2 %753  ;;  %vm807_vm0 = vweird.f32 %v1449_v6 }
 0x2ba   :  { %v692_v56 = vsub.f32 %v1819_v19, %v659_v52  ;;  %1450 = vrcp.f32 %v754_v21  ;;  %vm808_vm2 = vmor %vm806_vm1, %vm807_vm0  ;;  %v827_v31 = vand.u32 2147483648, %v754_v21  ;;  %v825_v24 = vand.u32 2147483647, %v754_v21 }
 0x2bb   :  { %v803_v11 = vsub.f32 1.0, %v802_v50  ;;  %vm821_vm5 = vweird.f32 %v754_v21 }
 0x2bc   :  { %v733_v61 = vmul.f32 1.442695, %v692_v56  ;;  %v828_v28 = vor.u32 1.1754944e-38, %v827_v31  ;;  %vm826_vm7 = vcmp.eq.f32.partialorder %v825_v24, 8.507059e+37 }
 0x2bd   :  { %v804_v63 = vmul.f32 %v1449_v6, %v803_v11 }
 0x2be   :  { %1452 = vpow2.f32 %v733_v61 }
 0x2bf   :  { %v805_v5 = vadd.f32 %v1449_v6, %v804_v63 }
 0x2c0   :  { %v1451_v7 = vpop.eup %1450 }
 0x2c1   :  { %v809_v53 = vsel %vm808_vm2, %v1449_v6, %v805_v5  ;;  %v817_v55 = vmul.f32 %v1451_v7, %v754_v21  ;;  %v661_v10 = vpop.xlane.xlu2 %660  ;;  %v756_v13 = vpop.xlane.xlu0 %755  ;;  %vm822_vm4 = vweird.f32 %v1451_v7 }
 0x2c2   :  { %v814_v14 = vsel %vm811_vm3, %v813_v8, %v809_v53  ;;  %v693_v19 = vsub.f32 %v1827_v26, %v661_v10  ;;  %1454 = vrcp.f32 %v756_v13  ;;  %v699_v26 = vsub.f32 %v1761_v46, %v1843_v41  ;;  %vm823_vm6 = vmor %vm821_vm5, %vm822_vm4 }
 0x2c3   :  { %v815_v16 = vmul.f32 %v1814_v15, %v814_v14  ;;  %v818_v57 = vsub.f32 1.0, %v817_v55  ;;  %v842_v41 = vand.u32 2147483648, %v756_v13  ;;  %v840_v50 = vand.u32 2147483647, %v756_v13 }
 0x2c4   :  { %v1909_v18 = vpop.eup %1452  ;;  %v735_v59 = vmul.f32 1.442695, %v693_v19  ;;  %v747_v2 = vmul.f32 1.442695, %v699_v26  ;;  %vm836_vm9 = vweird.f32 %v756_v13 }
 0x2c5   :  { %1176 = vst [vmem:[%s2065_s7] sm:$0xff] %v815_v16  ;;  %v819_v23 = vmul.f32 %v1451_v7, %v818_v57  ;;  %783 = vadd.xlane.f32.xlu2 %v1909_v18  ;;  %v843_v56 = vor.u32 1.1754944e-38, %v842_v41  ;;  %vm841_vm11 = vcmp.eq.f32.partialorder %v840_v50, 8.507059e+37 }
 0x2c6   :  { %1456 = vpow2.f32 %v735_v59 }
 0x2c7   :  { %v820_v62 = vadd.f32 %v1451_v7, %v819_v23 }
 0x2c8   :  { %v1455_v15 = vpop.eup %1454 }
 0x2c9   :  { %v824_v29 = vsel %vm823_vm6, %v1451_v7, %v820_v62  ;;  %v832_v0 = vmul.f32 %v1455_v15, %v756_v13  ;;  %v758_v32 = vpop.xlane.xlu1 %757  ;;  %v663_v33 = vpop.xlane.xlu0 %662  ;;  %vm837_vm8 = vweird.f32 %v1455_v15 }
 0x2ca   :  { %v829_v36 = vsel %vm826_vm7, %v828_v28, %v824_v29  ;;  %1458 = vrcp.f32 %v758_v32  ;;  %v694_v40 = vsub.f32 %v1836_v37, %v663_v33  ;;  %vm838_vm10 = vmor %vm836_vm9, %vm837_vm8  ;;  %v857_v55 = vand.u32 2147483648, %v758_v32 }
 0x2cb   :  { %v830_v39 = vmul.f32 %v1821_v20, %v829_v36  ;;  %v833_v4 = vsub.f32 1.0, %v832_v0  ;;  %1460 = vpow2.f32 %v747_v2  ;;  %v700_v20 = vsub.f32 %v1765_v49, %v1854_v48 }
 0x2cc   :  { %v1919_v46 = vpop.eup %1456  ;;  %v737_v52 = vmul.f32 1.442695, %v694_v40  ;;  %v855_v14 = vand.u32 2147483647, %v758_v32  ;;  %vm851_vm13 = vweird.f32 %v758_v32  ;;  %v858_v57 = vor.u32 1.1754944e-38, %v857_v55 }
 0x2cd   :  { %1177 = vst [vmem:[%s2065_s7 + $0x8] sm:$0xff] %v830_v39  ;;  %v834_v6 = vmul.f32 %v1455_v15, %v833_v4  ;;  %785 = vadd.xlane.f32.xlu0 %v1919_v46  ;;  %v749_v49 = vmul.f32 1.442695, %v700_v20 }
 0x2ce   :  { %1462 = vpow2.f32 %v737_v52  ;;  %vm856_vm15 = vcmp.eq.f32.partialorder %v855_v14, 8.507059e+37 }
 0x2cf   :  { %v835_v21 = vadd.f32 %v1455_v15, %v834_v6 }
 0x2d0   :  { %v1459_v37 = vpop.eup %1458 }
 0x2d1   :  { %v839_v11 = vsel %vm838_vm10, %v1455_v15, %v835_v21  ;;  %v847_v58 = vmul.f32 %v1459_v37, %v758_v32  ;;  %v665_v61 = vpop.xlane.xlu1 %664  ;;  %v1927_v63 = vpop.xlane.xlu0 %791  ;;  %vm852_vm12 = vweird.f32 %v1459_v37 }
 0x2d2   :  { %v844_v1 = vsel %vm841_vm11, %v843_v56, %v839_v11  ;;  %v695_v5 = vsub.f32 %v1848_v45, %v665_v61  ;;  %v1930_v7 = vpop.xlane.xlu2 %759  ;;  %1464 = vrcp.f32 %v1927_v63  ;;  %v1935_v53 = vpop.eup %1460  ;;  %vm853_vm14 = vmor %vm851_vm13, %vm852_vm12  ;;  %v1112_v0 = vand.u32 2147483648, %v1927_v63 }
 0x2d3   :  { %v845_v48 = vmul.f32 %v1829_v27, %v844_v1  ;;  %v848_v8 = vsub.f32 1.0, %v847_v58  ;;  %1466 = vrcp.f32 %v1930_v7  ;;  %v698_v27 = vsub.f32 %v1753_v42, %v1857_v38 }
 0x2d4   :  { %v739_v10 = vmul.f32 1.442695, %v695_v5  ;;  %v1937_v13 = vpop.eup %1462  ;;  %v872_v33 = vand.u32 2147483648, %v1930_v7  ;;  %v1110_v36 = vand.u32 2147483647, %v1927_v63  ;;  %vm1106_vm2 = vweird.f32 %v1927_v63 }
 0x2d5   :  { %1178 = vst [vmem:[%s2065_s7 + $0x10] sm:$0xff] %v845_v48  ;;  %v849_v45 = vmul.f32 %v1459_v37, %v848_v8  ;;  %797 = vadd.xlane.f32.xlu0 %v1935_v53  ;;  %787 = vadd.xlane.f32.xlu1 %v1937_v13  ;;  %v745_v26 = vmul.f32 1.442695, %v698_v27  ;;  %v870_v39 = vand.u32 2147483647, %v1930_v7  ;;  %vm866_vm3 = vweird.f32 %v1930_v7 }
 0x2d6   :  { %1468 = vpow2.f32 %v739_v10  ;;  %v1113_v6 = vor.u32 1.1754944e-38, %v1112_v0  ;;  %v873_v50 = vor.u32 1.1754944e-38, %v872_v33  ;;  %vm1111_vm6 = vcmp.eq.f32.partialorder %v1110_v36, 8.507059e+37 }
 0x2d7   :  { %1470 = vpow2.f32 %v749_v49  ;;  %v850_v19 = vadd.f32 %v1459_v37, %v849_v45  ;;  %vm871_vm7 = vcmp.eq.f32.partialorder %v870_v39, 8.507059e+37 }
 0x2d8   :  { %v1465_v16 = vpop.eup %1464 }
 0x2d9   :  { %v1467_v31 = vpop.eup %1466  ;;  %v854_v59 = vsel %vm853_vm14, %v1459_v37, %v850_v19  ;;  %v1102_v23 = vmul.f32 %v1465_v16, %v1927_v63  ;;  %v794_v24 = vpop.xlane.xlu1 %793  ;;  %vm1107_vm0 = vweird.f32 %v1465_v16 }
 0x2da   :  { %v859_v62 = vsel %vm856_vm15, %v858_v57, %v854_v59  ;;  %v862_v15 = vmul.f32 %v1467_v31, %v1930_v7  ;;  %1472 = vrcp.f32 %v794_v24  ;;  %vm867_vm1 = vweird.f32 %v1467_v31  ;;  %vm1108_vm4 = vmor %vm1106_vm2, %vm1107_vm0 }
 0x2db   :  { %v860_v42 = vmul.f32 %v1838_v60, %v859_v62  ;;  %v1103_v38 = vsub.f32 1.0, %v1102_v23  ;;  %1474 = vpow2.f32 %v745_v26  ;;  %vm868_vm5 = vmor %vm866_vm3, %vm867_vm1  ;;  %v1127_v5 = vand.u32 2147483648, %v794_v24 }
 0x2dc   :  { %v1949_v28 = vpop.eup %1468  ;;  %v863_v29 = vsub.f32 1.0, %v862_v15  ;;  %v1125_v49 = vand.u32 2147483647, %v794_v24  ;;  %vm1121_vm9 = vweird.f32 %v794_v24 }
 0x2dd   :  { %v1952_v32 = vpop.eup %1470  ;;  %1179 = vst [vmem:[%s2065_s7 + $0x18] sm:$0xff] %v860_v42  ;;  %v1104_v2 = vmul.f32 %v1465_v16, %v1103_v38  ;;  %789 = vadd.xlane.f32.xlu2 %v1949_v28 }
 0x2de   :  { %v864_v60 = vmul.f32 %v1467_v31, %v863_v29  ;;  %799 = vadd.xlane.f32.xlu1 %v1952_v32  ;;  %vm1126_vm11 = vcmp.eq.f32.partialorder %v1125_v49, 8.507059e+37 }
 0x2df   :  { %v1105_v4 = vadd.f32 %v1465_v16, %v1104_v2 }
 0x2e0   :  { %v1473_v40 = vpop.eup %1472  ;;  %v865_v41 = vadd.f32 %v1467_v31, %v864_v60 }
 0x2e1   :  { %v1109_v52 = vsel %vm1108_vm4, %v1465_v16, %v1105_v4  ;;  %v1117_v20 = vmul.f32 %v1473_v40, %v794_v24  ;;  %v762_v21 = vpop.xlane.xlu0 %761  ;;  %v1965_v63 = vpop.eup %1474  ;;  %vm1122_vm8 = vweird.f32 %v1473_v40 }
 0x2e2   :  { %v869_v37 = vsel %vm868_vm5, %v1467_v31, %v865_v41  ;;  %v1114_v56 = vsel %vm1111_vm6, %v1113_v6, %v1109_v52  ;;  %1476 = vrcp.f32 %v762_v21  ;;  %vm1123_vm10 = vmor %vm1121_vm9, %vm1122_vm8  ;;  %v885_v57 = vand.u32 2147483647, %v762_v21 }
 0x2e3   :  { %v874_v11 = vsel %vm871_vm7, %v873_v50, %v869_v37  ;;  %v1115_v58 = vmul.f32 %v1845_v44, %v1114_v56  ;;  %v1118_v61 = vsub.f32 1.0, %v1117_v20  ;;  %v887_v31 = vand.u32 2147483648, %v762_v21 }
 0x2e4   :  { %v875_v1 = vmul.f32 %v1850_v47, %v874_v11  ;;  %v1128_v47 = vor.u32 1.1754944e-38, %v1127_v5  ;;  %vm881_vm13 = vweird.f32 %v762_v21  ;;  %vm886_vm15 = vcmp.eq.f32.partialorder %v885_v57, 8.507059e+37 }
 0x2e5   :  { %1196 = vst [vmem:[%s2065_s7 + $0xa0] sm:$0xff] %v1115_v58  ;;  %v1119_v7 = vmul.f32 %v1473_v40, %v1118_v61  ;;  %795 = vadd.xlane.f32.xlu2 %v1965_v63  ;;  %v764_v48 = vpop.xlane.xlu1 %763  ;;  %v888_v15 = vor.u32 1.1754944e-38, %v887_v31 }
 0x2e6   :  { %1180 = vst [vmem:[%s2065_s7 + $0x20] sm:$0xff] %v875_v1  ;;  %1478 = vrcp.f32 %v764_v48  ;;  %v900_v42 = vand.u32 2147483647, %v764_v48  ;;  %vm896_vm1 = vweird.f32 %v764_v48 }
 0x2e7   :  { %v1120_v44 = vadd.f32 %v1473_v40, %v1119_v7 }
 0x2e8   :  { %v1477_v8 = vpop.eup %1476  ;;  %vm901_vm3 = vcmp.eq.f32.partialorder %v900_v42, 8.507059e+37 }
 0x2e9   :  { %v1124_v55 = vsel %vm1123_vm10, %v1473_v40, %v1120_v44  ;;  %v877_v10 = vmul.f32 %v1477_v8, %v762_v21  ;;  %v766_v45 = vpop.xlane.xlu2 %765  ;;  %vm882_vm12 = vweird.f32 %v1477_v8 }
 0x2ea   :  { %v1129_v14 = vsel %vm1126_vm11, %v1128_v47, %v1124_v55  ;;  %1480 = vrcp.f32 %v766_v45  ;;  %vm883_vm14 = vmor %vm881_vm13, %vm882_vm12  ;;  %v917_v40 = vand.u32 2147483648, %v766_v45  ;;  %v915_v50 = vand.u32 2147483647, %v766_v45 }
 0x2eb   :  { %v1130_v27 = vmul.f32 %v1860_v54, %v1129_v14  ;;  %v878_v19 = vsub.f32 1.0, %v877_v10  ;;  %v902_v54 = vand.u32 2147483648, %v764_v48  ;;  %vm911_vm5 = vweird.f32 %v766_v45 }
 0x2ec   :  { %v1479_v16 = vpop.eup %1478  ;;  %v918_v37 = vor.u32 1.1754944e-38, %v917_v40  ;;  %vm916_vm7 = vcmp.eq.f32.partialorder %v915_v50, 8.507059e+37 }
 0x2ed   :  { %1197 = vst [vmem:[%s2065_s7 + $0xa8] sm:$0xff] %v1130_v27  ;;  %v879_v59 = vmul.f32 %v1477_v8, %v878_v19  ;;  %v892_v23 = vmul.f32 %v1479_v16, %v764_v48  ;;  %vm897_vm0 = vweird.f32 %v1479_v16  ;;  %v903_v4 = vor.u32 1.1754944e-38, %v902_v54 }
 0x2ee   :  { %vm898_vm2 = vmor %vm896_vm1, %vm897_vm0 }
 0x2ef   :  { %v880_v24 = vadd.f32 %v1477_v8, %v879_v59  ;;  %v893_v26 = vsub.f32 1.0, %v892_v23 }
 0x2f0   :  { %v1481_v62 = vpop.eup %1480 }
 0x2f1   :  { %v884_v38 = vsel %vm883_vm14, %v1477_v8, %v880_v24  ;;  %v894_v29 = vmul.f32 %v1479_v16, %v893_v26  ;;  %v907_v0 = vmul.f32 %v1481_v62, %v766_v45  ;;  %v768_v33 = vpop.xlane.xlu0 %767  ;;  %vm912_vm4 = vweird.f32 %v1481_v62 }
 0x2f2   :  { %v889_v2 = vsel %vm886_vm15, %v888_v15, %v884_v38  ;;  %1482 = vrcp.f32 %v768_v33  ;;  %vm913_vm6 = vmor %vm911_vm5, %vm912_vm4  ;;  %v932_v7 = vand.u32 2147483648, %v768_v33  ;;  %v930_v49 = vand.u32 2147483647, %v768_v33 }
 0x2f3   :  { %v890_v36 = vmul.f32 %v1865_v3, %v889_v2  ;;  %v895_v60 = vadd.f32 %v1479_v16, %v894_v29  ;;  %v908_v39 = vsub.f32 1.0, %v907_v0  ;;  %vm926_vm9 = vweird.f32 %v768_v33 }
 0x2f4   :  { %v933_v8 = vor.u32 1.1754944e-38, %v932_v7  ;;  %vm931_vm11 = vcmp.eq.f32.partialorder %v930_v49, 8.507059e+37 }
 0x2f5   :  { %1181 = vst [vmem:[%s2065_s7 + $0x28] sm:$0xff] %v890_v36  ;;  %v899_v41 = vsel %vm898_vm2, %v1479_v16, %v895_v60  ;;  %v909_v6 = vmul.f32 %v1481_v62, %v908_v39 }
 0x2f6   :  { %v904_v52 = vsel %vm901_vm3, %v903_v4, %v899_v41 }
 0x2f7   :  { %v905_v20 = vmul.f32 %v1868_v51, %v904_v52  ;;  %v910_v21 = vadd.f32 %v1481_v62, %v909_v6 }
 0x2f8   :  { %v1483_v3 = vpop.eup %1482 }
 0x2f9   :  { %1182 = vst [vmem:[%s2065_s7 + $0x30] sm:$0xff] %v905_v20  ;;  %v914_v56 = vsel %vm913_vm6, %v1481_v62, %v910_v21  ;;  %v922_v11 = vmul.f32 %v1483_v3, %v768_v33  ;;  %v770_v58 = vpop.xlane.xlu1 %769  ;;  %vm927_vm8 = vweird.f32 %v1483_v3 }
 0x2fa   :  { %v919_v61 = vsel %vm916_vm7, %v918_v37, %v914_v56  ;;  %1484 = vrcp.f32 %v770_v58  ;;  %vm928_vm10 = vmor %vm926_vm9, %vm927_vm8  ;;  %v947_v27 = vand.u32 2147483648, %v770_v58  ;;  %v945_v16 = vand.u32 2147483647, %v770_v58 }
 0x2fb   :  { %v920_v1 = vmul.f32 %v1872_v9, %v919_v61  ;;  %v923_v5 = vsub.f32 1.0, %v922_v11  ;;  %vm941_vm13 = vweird.f32 %v770_v58 }
 0x2fc   :  { %v948_v59 = vor.u32 1.1754944e-38, %v947_v27  ;;  %vm946_vm15 = vcmp.eq.f32.partialorder %v945_v16, 8.507059e+37 }
 0x2fd   :  { %1183 = vst [vmem:[%s2065_s7 + $0x38] sm:$0xff] %v920_v1  ;;  %v924_v51 = vmul.f32 %v1483_v3, %v923_v5 }
 0x2ff   :  { %v925_v48 = vadd.f32 %v1483_v3, %v924_v51 }
 0x300   :  { %v1485_v44 = vpop.eup %1484 }
 0x301   :  { %v929_v47 = vsel %vm928_vm10, %v1483_v3, %v925_v48  ;;  %v937_v55 = vmul.f32 %v1485_v44, %v770_v58  ;;  %v772_v10 = vpop.xlane.xlu2 %771  ;;  %vm942_vm12 = vweird.f32 %v1485_v44 }
 0x302   :  { %v934_v45 = vsel %vm931_vm11, %v933_v8, %v929_v47  ;;  %1486 = vrcp.f32 %v772_v10  ;;  %vm943_vm14 = vmor %vm941_vm13, %vm942_vm12  ;;  %v962_v42 = vand.u32 2147483648, %v772_v10  ;;  %v960_v38 = vand.u32 2147483647, %v772_v10 }
 0x303   :  { %v935_v9 = vmul.f32 %v1876_v12, %v934_v45  ;;  %v938_v14 = vsub.f32 1.0, %v937_v55  ;;  %vm956_vm1 = vweird.f32 %v772_v10 }
 0x304   :  { %v963_v33 = vor.u32 1.1754944e-38, %v962_v42  ;;  %vm961_vm3 = vcmp.eq.f32.partialorder %v960_v38, 8.507059e+37 }
 0x305   :  { %1184 = vst [vmem:[%s2065_s7 + $0x40] sm:$0xff] %v935_v9  ;;  %v939_v19 = vmul.f32 %v1485_v44, %v938_v14 }
 0x307   :  { %v940_v57 = vadd.f32 %v1485_v44, %v939_v19 }
 0x308   :  { %v1487_v31 = vpop.eup %1486 }
 0x309   :  { %v944_v23 = vsel %vm943_vm14, %v1485_v44, %v940_v57  ;;  %v952_v24 = vmul.f32 %v1487_v31, %v772_v10  ;;  %v774_v26 = vpop.xlane.xlu0 %773  ;;  %vm957_vm0 = vweird.f32 %v1487_v31 }
 0x30a   :  { %v949_v62 = vsel %vm946_vm15, %v948_v59, %v944_v23  ;;  %1488 = vrcp.f32 %v774_v26  ;;  %vm958_vm2 = vmor %vm956_vm1, %vm957_vm0  ;;  %v977_v40 = vand.u32 2147483648, %v774_v26  ;;  %v975_v6 = vand.u32 2147483647, %v774_v26 }
 0x30b   :  { %v950_v12 = vmul.f32 %v1880_v17, %v949_v62  ;;  %v953_v15 = vsub.f32 1.0, %v952_v24  ;;  %vm971_vm5 = vweird.f32 %v774_v26 }
 0x30c   :  { %v978_v20 = vor.u32 1.1754944e-38, %v977_v40  ;;  %vm976_vm7 = vcmp.eq.f32.partialorder %v975_v6, 8.507059e+37 }
 0x30d   :  { %1185 = vst [vmem:[%s2065_s7 + $0x48] sm:$0xff] %v950_v12  ;;  %v954_v54 = vmul.f32 %v1487_v31, %v953_v15 }
 0x30f   :  { %v955_v29 = vadd.f32 %v1487_v31, %v954_v54 }
 0x310   :  { %v1489_v0 = vpop.eup %1488 }
 0x311   :  { %v959_v2 = vsel %vm958_vm2, %v1487_v31, %v955_v29  ;;  %v967_v36 = vmul.f32 %v1489_v0, %v774_v26  ;;  %v776_v60 = vpop.xlane.xlu1 %775  ;;  %vm972_vm4 = vweird.f32 %v1489_v0 }
 0x312   :  { %v964_v39 = vsel %vm961_vm3, %v963_v33, %v959_v2  ;;  %1490 = vrcp.f32 %v776_v60  ;;  %vm973_vm6 = vmor %vm971_vm5, %vm972_vm4  ;;  %v992_v58 = vand.u32 2147483648, %v776_v60  ;;  %v990_v1 = vand.u32 2147483647, %v776_v60 }
 0x313   :  { %v965_v17 = vmul.f32 %v1884_v22, %v964_v39  ;;  %v968_v4 = vsub.f32 1.0, %v967_v36  ;;  %vm986_vm9 = vweird.f32 %v776_v60 }
 0x314   :  { %v993_v51 = vor.u32 1.1754944e-38, %v992_v58  ;;  %vm991_vm11 = vcmp.eq.f32.partialorder %v990_v1, 8.507059e+37 }
 0x315   :  { %1186 = vst [vmem:[%s2065_s7 + $0x50] sm:$0xff] %v965_v17  ;;  %v969_v41 = vmul.f32 %v1489_v0, %v968_v4 }
 0x317   :  { %v970_v50 = vadd.f32 %v1489_v0, %v969_v41 }
 0x318   :  { %v1491_v52 = vpop.eup %1490 }
 0x319   :  { %v974_v21 = vsel %vm973_vm6, %v1489_v0, %v970_v50  ;;  %v982_v3 = vmul.f32 %v1491_v52, %v776_v60  ;;  %v778_v37 = vpop.xlane.xlu2 %777  ;;  %vm987_vm8 = vweird.f32 %v1491_v52 }
 0x31a   :  { %v979_v56 = vsel %vm976_vm7, %v978_v20, %v974_v21  ;;  %1492 = vrcp.f32 %v778_v37  ;;  %vm988_vm10 = vmor %vm986_vm9, %vm987_vm8  ;;  %v1007_v55 = vand.u32 2147483648, %v778_v37  ;;  %v1005_v45 = vand.u32 2147483647, %v778_v37 }
 0x31b   :  { %v980_v22 = vmul.f32 %v1888_v25, %v979_v56  ;;  %v983_v11 = vsub.f32 1.0, %v982_v3  ;;  %vm1001_vm13 = vweird.f32 %v778_v37 }
 0x31c   :  { %v1008_v27 = vor.u32 1.1754944e-38, %v1007_v55  ;;  %vm1006_vm15 = vcmp.eq.f32.partialorder %v1005_v45, 8.507059e+37 }
 0x31d   :  { %1187 = vst [vmem:[%s2065_s7 + $0x58] sm:$0xff] %v980_v22  ;;  %v984_v61 = vmul.f32 %v1491_v52, %v983_v11 }
 0x31f   :  { %v985_v5 = vadd.f32 %v1491_v52, %v984_v61 }
 0x320   :  { %v1493_v7 = vpop.eup %1492 }
 0x321   :  { %v989_v49 = vsel %vm988_vm10, %v1491_v52, %v985_v5  ;;  %v997_v48 = vmul.f32 %v1493_v7, %v778_v37  ;;  %v780_v44 = vpop.xlane.xlu0 %779  ;;  %vm1002_vm12 = vweird.f32 %v1493_v7 }
 0x322   :  { %v994_v8 = vsel %vm991_vm11, %v993_v51, %v989_v49  ;;  %1494 = vrcp.f32 %v780_v44  ;;  %vm1003_vm14 = vmor %vm1001_vm13, %vm1002_vm12  ;;  %v1022_v23 = vand.u32 2147483648, %v780_v44  ;;  %v1020_v26 = vand.u32 2147483647, %v780_v44 }
 0x323   :  { %v995_v25 = vmul.f32 %v1892_v30, %v994_v8  ;;  %v998_v47 = vsub.f32 1.0, %v997_v48  ;;  %vm1016_vm1 = vweird.f32 %v780_v44 }
 0x324   :  { %v1023_v15 = vor.u32 1.1754944e-38, %v1022_v23  ;;  %vm1021_vm3 = vcmp.eq.f32.partialorder %v1020_v26, 8.507059e+37 }
 0x325   :  { %1188 = vst [vmem:[%s2065_s7 + $0x60] sm:$0xff] %v995_v25  ;;  %v999_v10 = vmul.f32 %v1493_v7, %v998_v47 }
 0x327   :  { %v1000_v9 = vadd.f32 %v1493_v7, %v999_v10 }
 0x328   :  { %v1495_v14 = vpop.eup %1494 }
 0x329   :  { %v1004_v19 = vsel %vm1003_vm14, %v1493_v7, %v1000_v9  ;;  %v1012_v16 = vmul.f32 %v1495_v14, %v780_v44  ;;  %v782_v57 = vpop.xlane.xlu1 %781  ;;  %vm1017_vm0 = vweird.f32 %v1495_v14 }
 0x32a   :  { %v1009_v31 = vsel %vm1006_vm15, %v1008_v27, %v1004_v19  ;;  %1496 = vrcp.f32 %v782_v57  ;;  %vm1018_vm2 = vmor %vm1016_vm1, %vm1017_vm0  ;;  %v1037_v0 = vand.u32 2147483648, %v782_v57  ;;  %v1035_v2 = vand.u32 2147483647, %v782_v57 }
 0x32b   :  { %v1010_v30 = vmul.f32 %v1896_v34, %v1009_v31  ;;  %v1013_v59 = vsub.f32 1.0, %v1012_v16  ;;  %vm1031_vm5 = vweird.f32 %v782_v57 }
 0x32c   :  { %v1038_v60 = vor.u32 1.1754944e-38, %v1037_v0  ;;  %vm1036_vm7 = vcmp.eq.f32.partialorder %v1035_v2, 8.507059e+37 }
 0x32d   :  { %1189 = vst [vmem:[%s2065_s7 + $0x68] sm:$0xff] %v1010_v30  ;;  %v1014_v24 = vmul.f32 %v1495_v14, %v1013_v59 }
 0x32f   :  { %v1015_v62 = vadd.f32 %v1495_v14, %v1014_v24 }
 0x330   :  { %v1497_v12 = vpop.eup %1496 }
 0x331   :  { %v1019_v42 = vsel %vm1018_vm2, %v1495_v14, %v1015_v62  ;;  %v1027_v54 = vmul.f32 %v1497_v12, %v782_v57  ;;  %vm1032_vm4 = vweird.f32 %v1497_v12 }
 0x332   :  { %v1024_v38 = vsel %vm1021_vm3, %v1023_v15, %v1019_v42  ;;  %vm1033_vm6 = vmor %vm1031_vm5, %vm1032_vm4 }
 0x333   :  { %v1025_v34 = vmul.f32 %v1900_v35, %v1024_v38  ;;  %v1028_v29 = vsub.f32 1.0, %v1027_v54 }
 0x335   :  { %1190 = vst [vmem:[%s2065_s7 + $0x70] sm:$0xff] %v1025_v34  ;;  %v1029_v33 = vmul.f32 %v1497_v12, %v1028_v29 }
 0x337   :  { %v1030_v36 = vadd.f32 %v1497_v12, %v1029_v33 }
 0x338   :  { %v784_v39 = vpop.xlane.xlu2 %783 }
 0x339   :  { %v1034_v17 = vsel %vm1033_vm6, %v1497_v12, %v1030_v36  ;;  %1498 = vrcp.f32 %v784_v39  ;;  %v1052_v52 = vand.u32 2147483648, %v784_v39  ;;  %v1050_v21 = vand.u32 2147483647, %v784_v39 }
 0x33a   :  { %v1039_v4 = vsel %vm1036_vm7, %v1038_v60, %v1034_v17  ;;  %vm1046_vm9 = vweird.f32 %v784_v39 }
 0x33b   :  { %v1040_v35 = vmul.f32 %v1903_v43, %v1039_v4  ;;  %v1053_v56 = vor.u32 1.1754944e-38, %v1052_v52  ;;  %vm1051_vm11 = vcmp.eq.f32.partialorder %v1050_v21, 8.507059e+37 }
 0x33d   :  { %1191 = vst [vmem:[%s2065_s7 + $0x78] sm:$0xff] %v1040_v35 }
 0x33f   :  { %v1499_v40 = vpop.eup %1498 }
 0x340   :  { %v1042_v41 = vmul.f32 %v1499_v40, %v784_v39  ;;  %v786_v6 = vpop.xlane.xlu0 %785  ;;  %vm1047_vm8 = vweird.f32 %v1499_v40 }
 0x341   :  { %1500 = vrcp.f32 %v786_v6  ;;  %vm1048_vm10 = vmor %vm1046_vm9, %vm1047_vm8  ;;  %v1067_v7 = vand.u32 2147483648, %v786_v6  ;;  %v1065_v49 = vand.u32 2147483647, %v786_v6  ;;  %vm1061_vm13 = vweird.f32 %v786_v6 }
 0x342   :  { %v1043_v50 = vsub.f32 1.0, %v1042_v41 }
 0x343   :  { %v1068_v8 = vor.u32 1.1754944e-38, %v1067_v7  ;;  %vm1066_vm15 = vcmp.eq.f32.partialorder %v1065_v49, 8.507059e+37 }
 0x344   :  { %v1044_v20 = vmul.f32 %v1499_v40, %v1043_v50 }
 0x346   :  { %v1045_v3 = vadd.f32 %v1499_v40, %v1044_v20 }
 0x347   :  { %v1501_v37 = vpop.eup %1500 }
 0x348   :  { %v1049_v22 = vsel %vm1048_vm10, %v1499_v40, %v1045_v3  ;;  %v1057_v43 = vmul.f32 %v1501_v37, %v786_v6  ;;  %v798_v11 = vpop.xlane.xlu0 %797  ;;  %v788_v61 = vpop.xlane.xlu1 %787  ;;  %vm1062_vm12 = vweird.f32 %v1501_v37 }
 0x349   :  { %v1054_v58 = vsel %vm1051_vm11, %v1053_v56, %v1049_v22  ;;  %1502 = vrcp.f32 %v798_v11  ;;  %vm1063_vm14 = vmor %vm1061_vm13, %vm1062_vm12  ;;  %v1157_v16 = vand.u32 2147483648, %v798_v11  ;;  %v1082_v57 = vand.u32 2147483648, %v788_v61 }
 0x34a   :  { %v1055_v1 = vmul.f32 %v1909_v18, %v1054_v58  ;;  %v1058_v5 = vsub.f32 1.0, %v1057_v43  ;;  %1504 = vrcp.f32 %v788_v61  ;;  %v1155_v30 = vand.u32 2147483647, %v798_v11 }
 0x34b   :  { %v1080_v23 = vand.u32 2147483647, %v788_v61  ;;  %vm1151_vm2 = vweird.f32 %v798_v11  ;;  %vm1076_vm3 = vweird.f32 %v788_v61  ;;  %v1158_v62 = vor.u32 1.1754944e-38, %v1157_v16 }
 0x34c   :  { %1192 = vst [vmem:[%s2065_s7 + $0x80] sm:$0xff] %v1055_v1  ;;  %v1059_v51 = vmul.f32 %v1501_v37, %v1058_v5  ;;  %v1083_v12 = vor.u32 1.1754944e-38, %v1082_v57  ;;  %vm1156_vm6 = vcmp.eq.f32.partialorder %v1155_v30, 8.507059e+37 }
 0x34d   :  { %vm1081_vm7 = vcmp.eq.f32.partialorder %v1080_v23, 8.507059e+37 }
 0x34e   :  { %v1060_v48 = vadd.f32 %v1501_v37, %v1059_v51 }
 0x34f   :  { %v1503_v44 = vpop.eup %1502 }
 0x350   :  { %v1505_v25 = vpop.eup %1504  ;;  %v1064_v47 = vsel %vm1063_vm14, %v1501_v37, %v1060_v48  ;;  %v1147_v55 = vmul.f32 %v1503_v44, %v798_v11  ;;  %v790_v18 = vpop.xlane.xlu2 %789  ;;  %vm1152_vm0 = vweird.f32 %v1503_v44 }
 0x351   :  { %v1069_v10 = vsel %vm1066_vm15, %v1068_v8, %v1064_v47  ;;  %v1072_v45 = vmul.f32 %v1505_v25, %v788_v61  ;;  %1506 = vrcp.f32 %v790_v18  ;;  %v2027_v9 = vpop.xlane.xlu1 %799  ;;  %vm1077_vm1 = vweird.f32 %v1505_v25  ;;  %vm1153_vm4 = vmor %vm1151_vm2, %vm1152_vm0 }
 0x352   :  { %v1070_v14 = vmul.f32 %v1919_v46, %v1069_v10  ;;  %v1148_v27 = vsub.f32 1.0, %v1147_v55  ;;  %1508 = vrcp.f32 %v2027_v9  ;;  %vm1078_vm5 = vmor %vm1076_vm3, %vm1077_vm1  ;;  %v1097_v39 = vand.u32 2147483648, %v790_v18 }
 0x353   :  { %v1073_v19 = vsub.f32 1.0, %v1072_v45  ;;  %v1095_v4 = vand.u32 2147483647, %v790_v18  ;;  %vm1091_vm9 = vweird.f32 %v790_v18  ;;  %vm1166_vm12 = vweird.f32 %v2027_v9 }
 0x354   :  { %1193 = vst [vmem:[%s2065_s7 + $0x88] sm:$0xff] %v1070_v14  ;;  %v1149_v31 = vmul.f32 %v1503_v44, %v1148_v27  ;;  %v1098_v50 = vor.u32 1.1754944e-38, %v1097_v39 }
 0x355   :  { %v1074_v59 = vmul.f32 %v1505_v25, %v1073_v19  ;;  %vm1096_vm13 = vcmp.eq.f32.partialorder %v1095_v4, 8.507059e+37 }
 0x356   :  { %v1150_v24 = vadd.f32 %v1503_v44, %v1149_v31 }
 0x357   :  { %v1507_v26 = vpop.eup %1506  ;;  %v1075_v46 = vadd.f32 %v1505_v25, %v1074_v59 }
 0x358   :  { %v1154_v15 = vsel %vm1153_vm4, %v1503_v44, %v1150_v24  ;;  %v1087_v42 = vmul.f32 %v1507_v26, %v790_v18  ;;  %v796_v54 = vpop.xlane.xlu2 %795  ;;  %v1509_v38 = vpop.eup %1508  ;;  %vm1092_vm8 = vweird.f32 %v1507_v26 }
 0x359   :  { %v1079_v34 = vsel %vm1078_vm5, %v1505_v25, %v1075_v46  ;;  %v1159_v29 = vsel %vm1156_vm6, %v1158_v62, %v1154_v15  ;;  %1510 = vrcp.f32 %v796_v54  ;;  %v1162_v36 = vmul.f32 %v1509_v38, %v2027_v9  ;;  %vm1093_vm11 = vmor %vm1091_vm9, %vm1092_vm8 }
 0x35a   :  { %v1084_v0 = vsel %vm1081_vm7, %v1083_v12, %v1079_v34  ;;  %v1160_v33 = vmul.f32 %v1935_v53, %v1159_v29  ;;  %v1088_v2 = vsub.f32 1.0, %v1087_v42  ;;  %v1172_v53 = vand.u32 2147483648, %v2027_v9 }
 0x35b   :  { %v1085_v60 = vmul.f32 %v1937_v13, %v1084_v0  ;;  %v1163_v35 = vsub.f32 1.0, %v1162_v36  ;;  %vm1167_vm10 = vweird.f32 %v1509_v38  ;;  %v1170_v13 = vand.u32 2147483647, %v2027_v9 }
 0x35c   :  { %1199 = vst [vmem:[%s2065_s7 + $0xb8] sm:$0xff] %v1160_v33  ;;  %v1089_v17 = vmul.f32 %v1507_v26, %v1088_v2  ;;  %vm1168_vm14 = vmor %vm1166_vm12, %vm1167_vm10  ;;  %v1173_v37 = vor.u32 1.1754944e-38, %v1172_v53  ;;  %v1142_v58 = vand.u32 2147483648, %v796_v54  ;;  %v1140_v5 = vand.u32 2147483647, %v796_v54 }
 0x35d   :  { %1194 = vst [vmem:[%s2065_s7 + $0x90] sm:$0xff] %v1085_v60  ;;  %v1164_v41 = vmul.f32 %v1509_v38, %v1163_v35  ;;  %vm1171_vm15 = vcmp.eq.f32.partialorder %v1170_v13, 8.507059e+37  ;;  %vm1136_vm1 = vweird.f32 %v796_v54 }
 0x35e   :  { %v1090_v40 = vadd.f32 %v1507_v26, %v1089_v17  ;;  %vm1141_vm3 = vcmp.eq.f32.partialorder %v1140_v5, 8.507059e+37 }
 0x35f   :  { %v1511_v6 = vpop.eup %1510  ;;  %v1165_v20 = vadd.f32 %v1509_v38, %v1164_v41 }
 0x360   :  { %v1094_v52 = vsel %vm1093_vm11, %v1507_v26, %v1090_v40  ;;  %v1132_v21 = vmul.f32 %v1511_v6, %v796_v54  ;;  %vm1137_vm0 = vweird.f32 %v1511_v6 }
 0x361   :  { %v1099_v3 = vsel %vm1096_vm13, %v1098_v50, %v1094_v52  ;;  %v1169_v22 = vsel %vm1168_vm14, %v1509_v38, %v1165_v20  ;;  %vm1138_vm2 = vmor %vm1136_vm1, %vm1137_vm0 }
 0x362   :  { %v1100_v56 = vmul.f32 %v1949_v28, %v1099_v3  ;;  %v1133_v43 = vsub.f32 1.0, %v1132_v21  ;;  %v1174_v11 = vsel %vm1171_vm15, %v1173_v37, %v1169_v22  ;;  %v1143_v28 = vor.u32 1.1754944e-38, %v1142_v58 }
 0x363   :  { %v1175_v61 = vmul.f32 %v1952_v32, %v1174_v11 }
 0x364   :  { %1195 = vst [vmem:[%s2065_s7 + $0x98] sm:$0xff] %v1100_v56  ;;  %v1134_v1 = vmul.f32 %v1511_v6, %v1133_v43 }
 0x365   :  { %1200 = vst [vmem:[%s2065_s7 + $0xc0] sm:$0xff] %v1175_v61 }
 0x366   :  { %v1135_v7 = vadd.f32 %v1511_v6, %v1134_v1 }
 0x368   :  { %v1139_v51 = vsel %vm1138_vm2, %v1511_v6, %v1135_v7 }
 0x369   :  { %v1144_v49 = vsel %vm1141_vm3, %v1143_v28, %v1139_v51 }
 0x36a   :  { %v1145_v48 = vmul.f32 %v1965_v63, %v1144_v49 }
 0x36c   :  { %1198 = vst [vmem:[%s2065_s7 + $0xb0] sm:$0xff] %v1145_v48 }

</bundles_post_ra>
